<compile_context>
chip_gen: v5e
topology: v5e:2x2
jax: 0.10.0
libtpu: 0.0.40
codegen_flags: <defaults>
</compile_context>

<pallas_src>
import jax
import jax.numpy as jnp
from jax.experimental import pallas as pl
from jax.experimental.pallas import tpu as pltpu


def dssm_kernel(q_ref, s_ref, w1_ref, b1_ref, w2_ref, b2_ref, out_ref):
    """sigmoid(cos(MLP(query), MLP(sentence))) for one batch tile."""

    def mlp(x):
        # linear0 + relu0   (dropout0 = identity at inference)
        h = jnp.dot(x, w1_ref[...], preferred_element_type=jnp.float32)
        h = jnp.maximum(h + b1_ref[...], 0.0)
        # linear1 + relu1   (dropout1 = identity at inference)
        h = jnp.dot(h, w2_ref[...], preferred_element_type=jnp.float32)
        return jnp.maximum(h + b2_ref[...], 0.0)

    hq = mlp(q_ref[...])            # (TB, H2)
    hs = mlp(s_ref[...])            # (TB, H2)

    # Row-wise reductions -> lane-major (TB,) vectors so the whole epilogue
    # (sqrt / +eps / reciprocal / sigmoid) runs on 128-lane-dense vregs and the
    # final store is a full-width unmasked vst on the (1, TB) output row.
    dot = jnp.sum(hq * hs, axis=-1)                       # (TB,)
    qn2 = jnp.sum(hq * hq, axis=-1)                       # (TB,)
    sn2 = jnp.sum(hs * hs, axis=-1)                       # (TB,)

    # cos = (q.s) / ((|q|+1e-7) * (|s|+1e-7))  -- same eps semantics as the
    # module's  (x / (norm + 1e-7))  normalization, with the divide done once
    # on the lane-dense scalar-per-row vector (EUP approx reciprocal).
    denom = (jnp.sqrt(qn2) + 1e-7) * (jnp.sqrt(sn2) + 1e-7)
    cos = dot * pl.reciprocal(denom, approx=True)
    out_ref[...] = jax.nn.sigmoid(cos)[None, :]           # (1, TB) lane-dense


def _pick_block_b(batch, cap=2048):
    """Batch tile: a multiple of 128 (lane-dense output chunk), capped so the
    lane-padded working set stays well under the scoped VMEM budget on every
    generation, and chosen so the grid has >= 2 steps whenever possible (so
    the 'parallel' batch axis can feed both TensorCores on v7x)."""
    half = -(-batch // 2)                    # ceil(B / 2)
    half_up = -(-half // 128) * 128          # round up to a multiple of 128
    return int(max(128, min(cap, half_up)))


def dssm_forward(sentence, query, w1, b1, w2, b2, *, block_b=None):
    B, NV = query.shape
    assert sentence.shape == (B, NV)
    H1 = w1.shape[1]
    H2 = w2.shape[1]

    if block_b is None:
        block_b = _pick_block_b(B)
    assert block_b % 128 == 0, block_b

    # Pad the batch up to a tile multiple (padded rows are sliced off below):
    # keeps big contiguous DMAs and a short grid regardless of awkward B.
    Bp = pl.cdiv(B, block_b) * block_b
    if Bp != B:
        pad = ((0, Bp - B), (0, 0))
        query = jnp.pad(query, pad)
        sentence = jnp.pad(sentence, pad)
    grid = (Bp // block_b,)

    # Weights/biases: constant index_map -> VMEM-resident across grid steps.
    resident = lambda shape: pl.BlockSpec(shape, lambda i: (0, 0))
    # Activations: tiled along the batch (sublane) axis.
    batched = lambda shape: pl.BlockSpec(shape, lambda i: (i, 0))

    # Per-step VMEM with 128-lane padding of the 32/64-wide buffers
    # (block_b = 2048, f32): q/s input tiles 2 x 1 MiB x 2 buffers = 4 MiB,
    # hq/hs + hidden intermediates ~4 MiB, weights/biases/output < 0.2 MiB
    # => ~9 MiB, comfortably inside the 32 MiB limit requested below (and far
    # under physical VMEM on v5e/v6e/v7x).
    out = pl.pallas_call(
        dssm_kernel,
        out_shape=jax.ShapeDtypeStruct((1, Bp), jnp.float32),
        grid=grid,
        in_specs=[
            batched((block_b, NV)),   # query tile
            batched((block_b, NV)),   # sentence tile
            resident((NV, H1)),       # w1
            resident((1, H1)),        # b1
            resident((H1, H2)),       # w2
            resident((1, H2)),        # b2
        ],
        # Lane-dense output: each grid step writes one full-width (1, block_b)
        # chunk of the (1, Bp) result row.
        out_specs=pl.BlockSpec((1, block_b), lambda i: (0, i)),
        compiler_params=pltpu.CompilerParams(
            dimension_semantics=("parallel",),   # megacore split on v7x
            vmem_limit_bytes=32 * 1024 * 1024,
        ),
    )(query, sentence, w1, b1, w2, b2)

    return out.reshape(Bp, 1)[:B]


def reference_forward(sentence, query, w1, b1, w2, b2):
    def mlp(x):
        h = jnp.maximum(x @ w1 + b1, 0.0)
        h = jnp.maximum(h @ w2 + b2, 0.0)
        return h

    q = mlp(query.astype(jnp.float32))
    s = mlp(sentence.astype(jnp.float32))
    qn = jnp.linalg.norm(q, axis=-1, keepdims=True) + 1e-7
    sn = jnp.linalg.norm(s, axis=-1, keepdims=True) + 1e-7
    cos = jnp.sum((q / qn) * (s / sn), axis=-1, keepdims=True)
    return jax.nn.sigmoid(cos)


if __name__ == "__main__":
    # Module config: nvocab = len(stoi) = 32, p['nhiddens'] = "64 32"
    # => nhiddens = [32, 64, 32] => Linear(32,64), Linear(64,32)
    NVOCAB, H1, H2 = 32, 64, 32

    key = jax.random.PRNGKey(0)
    k_s, k_q, k_w1, k_b1, k_w2, k_b2, k_s2, k_q2, k_s3, k_q3 = jax.random.split(key, 10)

    # Deterministic parameter init (uniform, ~ torch.nn.Linear default range).
    def lin_init(kw, kb, fan_in, fan_out):
        bound = 1.0 / (fan_in ** 0.5)
        w = jax.random.uniform(kw, (fan_in, fan_out), jnp.float32, -bound, bound)
        b = jax.random.uniform(kb, (1, fan_out), jnp.float32, -bound, bound)
        return w, b

    w1, b1 = lin_init(k_w1, k_b1, NVOCAB, H1)
    w2, b2 = lin_init(k_w2, k_b2, H1, H2)

    # Approx EUP reciprocal in the epilogue -> slightly looser tolerance than
    # the exact-f32 reference.
    TOL = dict(atol=2e-3, rtol=2e-3)

    # --- small-shape check (single grid step; exercises batch padding) ------
    B = 8
    sentence = jax.random.normal(k_s, (B, NVOCAB), jnp.float32)
    query = jax.random.normal(k_q, (B, NVOCAB), jnp.float32)
    score = jax.block_until_ready(dssm_forward(sentence, query, w1, b1, w2, b2))
    ref = reference_forward(sentence, query, w1, b1, w2, b2)
    assert score.shape == (B, 1), score.shape
    assert jnp.allclose(score, ref, **TOL), (score, ref)

    # --- odd batch, explicit block_b (padding + multi-step pipelined grid) ---
    B2 = 300
    sentence2 = jax.random.normal(k_s2, (B2, NVOCAB), jnp.float32)
    query2 = jax.random.normal(k_q2, (B2, NVOCAB), jnp.float32)
    score2 = jax.block_until_ready(
        dssm_forward(sentence2, query2, w1, b1, w2, b2, block_b=128))
    ref2 = reference_forward(sentence2, query2, w1, b1, w2, b2)
    assert score2.shape == (B2, 1), score2.shape
    assert jnp.allclose(score2, ref2, **TOL)

    # --- default tile picking (2 grid steps, no padding) ---------------------
    B3 = 2048
    sentence3 = jax.random.normal(k_s3, (B3, NVOCAB), jnp.float32)
    query3 = jax.random.normal(k_q3, (B3, NVOCAB), jnp.float32)
    score3 = jax.block_until_ready(dssm_forward(sentence3, query3, w1, b1, w2, b2))
    ref3 = reference_forward(sentence3, query3, w1, b1, w2, b2)
    assert score3.shape == (B3, 1), score3.shape
    assert jnp.allclose(score3, ref3, **TOL)

    print("KERNEL_OK")
</pallas_src>

<mosaic_0001>
module attributes {stable_mosaic.version = 11 : i64} {
  func.func @dssm_kernel(%arg0: i32, %arg1: memref<128x32xf32, #tpu.memory_space<vmem>>, %arg2: memref<128x32xf32, #tpu.memory_space<vmem>>, %arg3: memref<32x64xf32, #tpu.memory_space<vmem>>, %arg4: memref<1x64xf32, #tpu.memory_space<vmem>>, %arg5: memref<64x32xf32, #tpu.memory_space<vmem>>, %arg6: memref<1x32xf32, #tpu.memory_space<vmem>>, %arg7: memref<1x128xf32, #tpu.memory_space<vmem>>) attributes {dimension_semantics = [#tpu.dimension_semantics<parallel>], iteration_bounds = array<i64: 1>, scalar_prefetch = 0 : i64, scratch_operands = 0 : i64, tpu.core_type = #tpu.core_type<tc>, window_params = [{transform_indices = @transform_0, window_bounds = array<i64: 128, 32>}, {transform_indices = @transform_1, window_bounds = array<i64: 128, 32>}, {pipeline_mode = #tpu.pipeline_mode<synchronous>, transform_indices = @transform_2, window_bounds = array<i64: 32, 64>}, {pipeline_mode = #tpu.pipeline_mode<synchronous>, transform_indices = @transform_3, window_bounds = array<i64: 1, 64>}, {pipeline_mode = #tpu.pipeline_mode<synchronous>, transform_indices = @transform_4, window_bounds = array<i64: 64, 32>}, {pipeline_mode = #tpu.pipeline_mode<synchronous>, transform_indices = @transform_5, window_bounds = array<i64: 1, 32>}, {transform_indices = @transform_6, window_bounds = array<i64: 1, 128>}]} {
    %c0 = arith.constant 0 : index
    %c0_0 = arith.constant 0 : index
    %0 = vector.load %arg1[%c0, %c0_0] : memref<128x32xf32, #tpu.memory_space<vmem>>, vector<128x32xf32>
    %c0_1 = arith.constant 0 : index
    %c0_2 = arith.constant 0 : index
    %1 = vector.load %arg3[%c0_1, %c0_2] : memref<32x64xf32, #tpu.memory_space<vmem>>, vector<32x64xf32>
    %cst = arith.constant dense<0.000000e+00> : vector<128x64xf32>
    %2 = tpu.matmul %0, %1, %cst {dimension_numbers = #tpu.dot_dimension_numbers<[1], [0], [0], [1], [0, 0, 1, 1], [], []>} : vector<128x32xf32>, vector<32x64xf32>, vector<128x64xf32> -> vector<128x64xf32>
    %c0_3 = arith.constant 0 : index
    %c0_4 = arith.constant 0 : index
    %3 = vector.load %arg4[%c0_3, %c0_4] : memref<1x64xf32, #tpu.memory_space<vmem>>, vector<1x64xf32>
    %4 = vector.broadcast %3 : vector<1x64xf32> to vector<128x64xf32>
    %5 = arith.addf %2, %4 : vector<128x64xf32>
    %cst_5 = arith.constant 0.000000e+00 : f32
    %6 = vector.broadcast %cst_5 : f32 to vector<128x64xf32>
    %7 = arith.maximumf %5, %6 : vector<128x64xf32>
    %c0_6 = arith.constant 0 : index
    %c0_7 = arith.constant 0 : index
    %8 = vector.load %arg5[%c0_6, %c0_7] : memref<64x32xf32, #tpu.memory_space<vmem>>, vector<64x32xf32>
    %cst_8 = arith.constant dense<0.000000e+00> : vector<128x32xf32>
    %9 = tpu.matmul %7, %8, %cst_8 {dimension_numbers = #tpu.dot_dimension_numbers<[1], [0], [0], [1], [0, 0, 1, 1], [], []>} : vector<128x64xf32>, vector<64x32xf32>, vector<128x32xf32> -> vector<128x32xf32>
    %c0_9 = arith.constant 0 : index
    %c0_10 = arith.constant 0 : index
    %10 = vector.load %arg6[%c0_9, %c0_10] : memref<1x32xf32, #tpu.memory_space<vmem>>, vector<1x32xf32>
    %11 = vector.broadcast %10 : vector<1x32xf32> to vector<128x32xf32>
    %12 = arith.addf %9, %11 : vector<128x32xf32>
    %cst_11 = arith.constant 0.000000e+00 : f32
    %13 = vector.broadcast %cst_11 : f32 to vector<128x32xf32>
    %14 = arith.maximumf %12, %13 : vector<128x32xf32>
    %c0_12 = arith.constant 0 : index
    %c0_13 = arith.constant 0 : index
    %15 = vector.load %arg2[%c0_12, %c0_13] : memref<128x32xf32, #tpu.memory_space<vmem>>, vector<128x32xf32>
    %c0_14 = arith.constant 0 : index
    %c0_15 = arith.constant 0 : index
    %16 = vector.load %arg3[%c0_14, %c0_15] : memref<32x64xf32, #tpu.memory_space<vmem>>, vector<32x64xf32>
    %cst_16 = arith.constant dense<0.000000e+00> : vector<128x64xf32>
    %17 = tpu.matmul %15, %16, %cst_16 {dimension_numbers = #tpu.dot_dimension_numbers<[1], [0], [0], [1], [0, 0, 1, 1], [], []>} : vector<128x32xf32>, vector<32x64xf32>, vector<128x64xf32> -> vector<128x64xf32>
    %c0_17 = arith.constant 0 : index
    %c0_18 = arith.constant 0 : index
    %18 = vector.load %arg4[%c0_17, %c0_18] : memref<1x64xf32, #tpu.memory_space<vmem>>, vector<1x64xf32>
    %19 = vector.broadcast %18 : vector<1x64xf32> to vector<128x64xf32>
    %20 = arith.addf %17, %19 : vector<128x64xf32>
    %cst_19 = arith.constant 0.000000e+00 : f32
    %21 = vector.broadcast %cst_19 : f32 to vector<128x64xf32>
    %22 = arith.maximumf %20, %21 : vector<128x64xf32>
    %c0_20 = arith.constant 0 : index
    %c0_21 = arith.constant 0 : index
    %23 = vector.load %arg5[%c0_20, %c0_21] : memref<64x32xf32, #tpu.memory_space<vmem>>, vector<64x32xf32>
    %cst_22 = arith.constant dense<0.000000e+00> : vector<128x32xf32>
    %24 = tpu.matmul %22, %23, %cst_22 {dimension_numbers = #tpu.dot_dimension_numbers<[1], [0], [0], [1], [0, 0, 1, 1], [], []>} : vector<128x64xf32>, vector<64x32xf32>, vector<128x32xf32> -> vector<128x32xf32>
    %c0_23 = arith.constant 0 : index
    %c0_24 = arith.constant 0 : index
    %25 = vector.load %arg6[%c0_23, %c0_24] : memref<1x32xf32, #tpu.memory_space<vmem>>, vector<1x32xf32>
    %26 = vector.broadcast %25 : vector<1x32xf32> to vector<128x32xf32>
    %27 = arith.addf %24, %26 : vector<128x32xf32>
    %cst_25 = arith.constant 0.000000e+00 : f32
    %28 = vector.broadcast %cst_25 : f32 to vector<128x32xf32>
    %29 = arith.maximumf %27, %28 : vector<128x32xf32>
    %30 = arith.mulf %14, %29 : vector<128x32xf32>
    %cst_26 = arith.constant dense<0.000000e+00> : vector<128xf32>
    %31 = vector.multi_reduction <add>, %30, %cst_26 [1] : vector<128x32xf32> to vector<128xf32>
    %32 = arith.mulf %14, %14 : vector<128x32xf32>
    %cst_27 = arith.constant dense<0.000000e+00> : vector<128xf32>
    %33 = vector.multi_reduction <add>, %32, %cst_27 [1] : vector<128x32xf32> to vector<128xf32>
    %34 = arith.mulf %29, %29 : vector<128x32xf32>
    %cst_28 = arith.constant dense<0.000000e+00> : vector<128xf32>
    %35 = vector.multi_reduction <add>, %34, %cst_28 [1] : vector<128x32xf32> to vector<128xf32>
    %36 = math.sqrt %33 : vector<128xf32>
    %cst_29 = arith.constant 1.000000e-07 : f32
    %37 = vector.broadcast %cst_29 : f32 to vector<128xf32>
    %38 = arith.addf %36, %37 : vector<128xf32>
    %39 = math.sqrt %35 : vector<128xf32>
    %cst_30 = arith.constant 1.000000e-07 : f32
    %40 = vector.broadcast %cst_30 : f32 to vector<128xf32>
    %41 = arith.addf %39, %40 : vector<128xf32>
    %42 = arith.mulf %38, %41 : vector<128xf32>
    %43 = tpu.reciprocal %42 {approx = true} : vector<128xf32> -> vector<128xf32>
    %44 = arith.mulf %31, %43 : vector<128xf32>
    %45 = arith.negf %44 : vector<128xf32>
    %46 = math.exp %45 : vector<128xf32>
    %cst_31 = arith.constant 1.000000e+00 : f32
    %47 = vector.broadcast %cst_31 : f32 to vector<128xf32>
    %48 = arith.addf %47, %46 : vector<128xf32>
    %49 = arith.divf %47, %48 : vector<128xf32>
    %50 = vector.shape_cast %49 : vector<128xf32> to vector<1x128xf32>
    %c0_32 = arith.constant 0 : index
    %c0_33 = arith.constant 0 : index
    %51 = vector.load %arg7[%c0_32, %c0_33] : memref<1x128xf32, #tpu.memory_space<vmem>>, vector<1x128xf32>
    tpu.vector_store %arg7[%c0_32, %c0_33], %50 {strides = array<i32>} : memref<1x128xf32, #tpu.memory_space<vmem>>, vector<1x128xf32>,
    return
  }
  func.func @transform_0(%arg0: i32) -> (i32, i32) {
    %c0_i32 = arith.constant 0 : i32
    %c0_i32_0 = arith.constant 0 : i32
    return %arg0, %c0_i32 : i32, i32
  }
  func.func @transform_1(%arg0: i32) -> (i32, i32) {
    %c0_i32 = arith.constant 0 : i32
    %c0_i32_0 = arith.constant 0 : i32
    return %arg0, %c0_i32 : i32, i32
  }
  func.func @transform_2(%arg0: i32) -> (i32, i32) {
    %c0_i32 = arith.constant 0 : i32
    %c0_i32_0 = arith.constant 0 : i32
    %c0_i32_1 = arith.constant 0 : i32
    return %c0_i32, %c0_i32_0 : i32, i32
  }
  func.func @transform_3(%arg0: i32) -> (i32, i32) {
    %c0_i32 = arith.constant 0 : i32
    %c0_i32_0 = arith.constant 0 : i32
    %c0_i32_1 = arith.constant 0 : i32
    return %c0_i32, %c0_i32_0 : i32, i32
  }
  func.func @transform_4(%arg0: i32) -> (i32, i32) {
    %c0_i32 = arith.constant 0 : i32
    %c0_i32_0 = arith.constant 0 : i32
    %c0_i32_1 = arith.constant 0 : i32
    return %c0_i32, %c0_i32_0 : i32, i32
  }
  func.func @transform_5(%arg0: i32) -> (i32, i32) {
    %c0_i32 = arith.constant 0 : i32
    %c0_i32_0 = arith.constant 0 : i32
    %c0_i32_1 = arith.constant 0 : i32
    return %c0_i32, %c0_i32_0 : i32, i32
  }
  func.func @transform_6(%arg0: i32) -> (i32, i32) {
    %c0_i32 = arith.constant 0 : i32
    %c0_i32_0 = arith.constant 0 : i32
    return %c0_i32, %arg0 : i32, i32
  }
}

</mosaic_0001>

<bundles_post_ra>
// kernel: tpu_custom_call.1
= control target key start
LH: loop header
LB: loop body
LE: loop exit
PB: predicated region body
PF: predicated region fallthrough
CT: control target
= control target key end

     0   :  { %vm48_vm0 = vcmask 261120   ;;  %s3146_s0 = inlined_call_operand.vmem [shape: f32[128,32], index: 0, kind: input, shape index: {}]   ;;  %s3147_s1 = inlined_call_operand.vmem [shape: f32[128,32], index: 1, kind: input, shape index: {}]   ;;  %s3148_s2 = inlined_call_operand.vmem [shape: f32[32,64], index: 2, kind: input, shape index: {}]   ;;  %s3149_s3 = inlined_call_operand.vmem [shape: f32[1,64], index: 3, kind: input, shape index: {}]   ;;  %s3150_s4 = inlined_call_operand.vmem [shape: f32[64,32], index: 4, kind: input, shape index: {}]   ;;  %s3151_s5 = inlined_call_operand.vmem [shape: f32[1,32], index: 5, kind: input, shape index: {}]   ;;  %s3152_s6 = inlined_call_operand.hbm [shape: f32[1,128], index: 6, kind: output, shape index: {}]  }
   0x1   :  { %v43_v0 = vld [vmem:[%s3148_s2 + $0x18] sm:$0xff]  ;;  %v42_v1 = vld [vmem:[%s3148_s2 + $0x10] sm:$0xff]  ;;  %v41_v2 = vld [vmem:[%s3148_s2 + $0x8] sm:$0xff] }
   0x2   :  { %109 = vmatpush.msra.mxu0 %v43_v0  ;;  %396 = vmatpush.msra.mxu2 %v43_v0  ;;  %v40_v3 = vld [vmem:[%s3148_s2] sm:$0xff] }
   0x3   :  { %v24_v4 = vld [vmem:[%s3146_s0] sm:$0xff] }
   0x4   :  { %110 = vmatpush.msra.mxu0 %v42_v1  ;;  %397 = vmatpush.msra.mxu2 %v42_v1  ;;  %v320_v5 = vld [vmem:[%s3147_s1] sm:$0xff] }
   0x6   :  { %111 = vmatpush.msra.mxu0 %v41_v2  ;;  %398 = vmatpush.msra.mxu2 %v41_v2 }
   0x7   :  { %11 = vsyncpa [#allocation3], 0  ;;  %v25_v6 = vld [vmem:[%s3146_s0 + $0x8] sm:$0xff]  ;;  %v322_v8 = vld [vmem:[%s3147_s1 + $0x10] sm:$0xff]  ;;  %vm190_vm1 = vcmask 523264   ;;  %s1642_s12 = sshll.u32 %s3152_s6, 4  ;;  %s1643_s12 = int_to_ptr.hbm [resolvable:$true] %s1642_s12 }
   0x8   :  { %112 = vmatpush.msra.mxu0 %v40_v3  ;;  %399 = vmatpush.msra.mxu2 %v40_v3  ;;  %v321_v7 = vld [vmem:[%s3147_s1 + $0x8] sm:$0xff]  ;;  %v26_v9 = vld [vmem:[%s3146_s0 + $0x10] sm:$0xff]  ;;  %v323_v10 = vld [vmem:[%s3147_s1 + $0x18] sm:$0xff] }
   0x9   :  { %1651 = vmatmul.msk.f32.vlgmr.msra.gmra.mxu0 %vm48_vm0, %v24_v4  ;;  %1683 = vmatmul.msk.f32.vlgmr.msra.gmra.mxu2 %vm48_vm0, %v320_v5  ;;  %v27_v11 = vld [vmem:[%s3146_s0 + $0x18] sm:$0xff]  ;;  %v324_v12 = vld [vmem:[%s3147_s1 + $0x20] sm:$0xff]  ;;  %v325_v14 = vld [vmem:[%s3147_s1 + $0x28] sm:$0xff] }
   0xa   :  { %v28_v13 = vld [vmem:[%s3146_s0 + $0x20] sm:$0xff]  ;;  %v29_v15 = vld [vmem:[%s3146_s0 + $0x28] sm:$0xff]  ;;  %v326_v16 = vld [vmem:[%s3147_s1 + $0x30] sm:$0xff] }
   0xb   :  { %v30_v17 = vld [vmem:[%s3146_s0 + $0x30] sm:$0xff]  ;;  %v327_v18 = vld [vmem:[%s3147_s1 + $0x38] sm:$0xff]  ;;  %v328_v20 = vld [vmem:[%s3147_s1 + $0x40] sm:$0xff] }
   0xc   :  { %v31_v19 = vld [vmem:[%s3146_s0 + $0x38] sm:$0xff]  ;;  %v32_v21 = vld [vmem:[%s3146_s0 + $0x40] sm:$0xff]  ;;  %v329_v22 = vld [vmem:[%s3147_s1 + $0x48] sm:$0xff] }
   0xd   :  { %v33_v23 = vld [vmem:[%s3146_s0 + $0x48] sm:$0xff]  ;;  %v330_v24 = vld [vmem:[%s3147_s1 + $0x50] sm:$0xff]  ;;  %v185_v26 = vld [vmem:[%s3150_s4 + $0x38] sm:$0xff] }
   0xe   :  { %v34_v25 = vld [vmem:[%s3146_s0 + $0x50] sm:$0xff]  ;;  %247 = vmatpush.msra.mxu1 %v185_v26  ;;  %521 = vmatpush.msra.mxu3 %v185_v26  ;;  %v183_v28 = vld [vmem:[%s3150_s4 + $0x28] sm:$0xff]  ;;  %v331_v29 = vld [vmem:[%s3147_s1 + $0x58] sm:$0xff] }
   0xf   :  { %v184_v27 = vld [vmem:[%s3150_s4 + $0x30] sm:$0xff]  ;;  %v35_v30 = vld [vmem:[%s3146_s0 + $0x58] sm:$0xff]  ;;  %v182_v31 = vld [vmem:[%s3150_s4 + $0x20] sm:$0xff] }
  0x10   :  { %248 = vmatpush.msra.mxu1 %v184_v27  ;;  %522 = vmatpush.msra.mxu3 %v184_v27  ;;  %v181_v32 = vld [vmem:[%s3150_s4 + $0x18] sm:$0xff]  ;;  %v180_v33 = vld [vmem:[%s3150_s4 + $0x10] sm:$0xff]  ;;  %v332_v34 = vld [vmem:[%s3147_s1 + $0x60] sm:$0xff] }
  0x11   :  { %1652 = vmatmul.msk.f32.gmra.mxu0 %vm48_vm0, %v25_v6  ;;  %1684 = vmatmul.msk.f32.gmra.mxu2 %vm48_vm0, %v321_v7  ;;  %v36_v35 = vld [vmem:[%s3146_s0 + $0x60] sm:$0xff]  ;;  %v179_v36 = vld [vmem:[%s3150_s4 + $0x8] sm:$0xff]  ;;  %v334_v40 = vld [vmem:[%s3147_s1 + $0x70] sm:$0xff] }
  0x12   :  { %249 = vmatpush.msra.mxu1 %v183_v28  ;;  %523 = vmatpush.msra.mxu3 %v183_v28  ;;  %v178_v37 = vld [vmem:[%s3150_s4] sm:$0xff]  ;;  %v333_v38 = vld [vmem:[%s3147_s1 + $0x68] sm:$0xff]  ;;  %v38_v41 = vld [vmem:[%s3146_s0 + $0x70] sm:$0xff] }
  0x13   :  { %v37_v39 = vld [vmem:[%s3146_s0 + $0x68] sm:$0xff]  ;;  %v335_v42 = vld [vmem:[%s3147_s1 + $0x78] sm:$0xff]  ;;  %v2123_v44 = vld [vmem:[%s3149_s3] ss:$0 sm:$0xff]  ;;  %s1920_s3 = smov [#allocation2]  }
  0x14   :  { %250 = vmatpush.msra.mxu1 %v182_v31  ;;  %524 = vmatpush.msra.mxu3 %v182_v31  ;;  %v39_v43 = vld [vmem:[%s3146_s0 + $0x78] sm:$0xff] }
  0x16   :  { %251 = vmatpush.msra.mxu1 %v181_v32  ;;  %525 = vmatpush.msra.mxu3 %v181_v32 }
  0x18   :  { %252 = vmatpush.msra.mxu1 %v180_v33  ;;  %526 = vmatpush.msra.mxu3 %v180_v33 }
  0x19   :  { %1685 = vmatmul.msk.f32.gmra.mxu2 %vm48_vm0, %v322_v8  ;;  %1653 = vmatmul.msk.f32.gmra.mxu0 %vm48_vm0, %v26_v9 }
  0x1a   :  { %253 = vmatpush.msra.mxu1 %v179_v36  ;;  %527 = vmatpush.msra.mxu3 %v179_v36 }
  0x1c   :  { %254 = vmatpush.msra.mxu1 %v178_v37  ;;  %528 = vmatpush.msra.mxu3 %v178_v37 }
  0x21   :  { %1686 = vmatmul.msk.f32.gmra.mxu2 %vm48_vm0, %v323_v10  ;;  %1654 = vmatmul.msk.f32.gmra.mxu0 %vm48_vm0, %v27_v11 }
  0x29   :  { %1687 = vmatmul.msk.f32.gmra.mxu2 %vm48_vm0, %v324_v12  ;;  %1655 = vmatmul.msk.f32.gmra.mxu0 %vm48_vm0, %v28_v13 }
  0x31   :  { %1688 = vmatmul.msk.f32.gmra.mxu2 %vm48_vm0, %v325_v14  ;;  %1656 = vmatmul.msk.f32.gmra.mxu0 %vm48_vm0, %v29_v15 }
  0x39   :  { %1689 = vmatmul.msk.f32.gmra.mxu2 %vm48_vm0, %v326_v16  ;;  %1657 = vmatmul.msk.f32.gmra.mxu0 %vm48_vm0, %v30_v17 }
  0x41   :  { %1690 = vmatmul.msk.f32.gmra.mxu2 %vm48_vm0, %v327_v18  ;;  %1658 = vmatmul.msk.f32.gmra.mxu0 %vm48_vm0, %v31_v19 }
  0x49   :  { %1691 = vmatmul.msk.f32.gmra.mxu2 %vm48_vm0, %v328_v20  ;;  %1659 = vmatmul.msk.f32.gmra.mxu0 %vm48_vm0, %v32_v21 }
  0x51   :  { %1692 = vmatmul.msk.f32.gmra.mxu2 %vm48_vm0, %v329_v22  ;;  %1660 = vmatmul.msk.f32.gmra.mxu0 %vm48_vm0, %v33_v23 }
  0x59   :  { %1693 = vmatmul.msk.f32.gmra.mxu2 %vm48_vm0, %v330_v24  ;;  %1661 = vmatmul.msk.f32.gmra.mxu0 %vm48_vm0, %v34_v25 }
  0x61   :  { %1694 = vmatmul.msk.f32.gmra.mxu2 %vm48_vm0, %v331_v29  ;;  %1662 = vmatmul.msk.f32.gmra.mxu0 %vm48_vm0, %v35_v30 }
  0x69   :  { %1695 = vmatmul.msk.f32.gmra.mxu2 %vm48_vm0, %v332_v34  ;;  %1663 = vmatmul.msk.f32.gmra.mxu0 %vm48_vm0, %v36_v35 }
  0x71   :  { %1696 = vmatmul.msk.f32.gmra.mxu2 %vm48_vm0, %v333_v38  ;;  %1664 = vmatmul.msk.f32.gmra.mxu0 %vm48_vm0, %v37_v39 }
  0x79   :  { %1697 = vmatmul.msk.f32.gmra.mxu2 %vm48_vm0, %v334_v40  ;;  %1665 = vmatmul.msk.f32.gmra.mxu0 %vm48_vm0, %v38_v41 }
  0x81   :  { %1698 = vmatmul.msk.f32.gmra.mxu2 %vm48_vm0, %v335_v42  ;;  %1666 = vmatmul.msk.f32.gmra.mxu0 %vm48_vm0, %v39_v43 }
  0x86   :  { %v114_v45 = vpop.f32.mrf.mxu0 }
  0x87   :  { %v115_v46 = vadd.f32 %v2123_v44, %v114_v45 }
  0x89   :  { %v162_v47 = vmax.f32 %v115_v46, 0.0 }
  0x8b   :  { %1667 = vmatmul.msk.f32.vlgmr.msra.gmra.mxu1 %vm190_vm1, %v162_v47 }
  0x8c   :  { %v401_v48 = vpop.f32.mrf.mxu2 }
  0x8d   :  { %v402_v49 = vadd.f32 %v2123_v44, %v401_v48 }
  0x8e   :  { %v117_v50 = vpop.f32.mrf.mxu0 }
  0x8f   :  { %v449_v51 = vmax.f32 %v402_v49, 0.0  ;;  %v118_v52 = vadd.f32 %v2123_v44, %v117_v50 }
  0x91   :  { %v163_v53 = vmax.f32 %v118_v52, 0.0  ;;  %1699 = vmatmul.msk.f32.vlgmr.msra.gmra.mxu3 %vm190_vm1, %v449_v51 }
  0x93   :  { %1668 = vmatmul.msk.f32.gmra.mxu1 %vm190_vm1, %v163_v53 }
  0x94   :  { %v404_v54 = vpop.f32.mrf.mxu2 }
  0x95   :  { %v405_v55 = vadd.f32 %v2123_v44, %v404_v54 }
  0x96   :  { %v120_v56 = vpop.f32.mrf.mxu0 }
  0x97   :  { %v450_v57 = vmax.f32 %v405_v55, 0.0  ;;  %v121_v58 = vadd.f32 %v2123_v44, %v120_v56 }
  0x99   :  { %1700 = vmatmul.msk.f32.gmra.mxu3 %vm190_vm1, %v450_v57  ;;  %v164_v59 = vmax.f32 %v121_v58, 0.0 }
  0x9b   :  { %1669 = vmatmul.msk.f32.gmra.mxu1 %vm190_vm1, %v164_v59 }
  0x9c   :  { %v407_v60 = vpop.f32.mrf.mxu2 }
  0x9d   :  { %v408_v61 = vadd.f32 %v2123_v44, %v407_v60 }
  0x9e   :  { %v123_v62 = vpop.f32.mrf.mxu0 }
  0x9f   :  { %v451_v63 = vmax.f32 %v408_v61, 0.0  ;;  %v124_v0 = vadd.f32 %v2123_v44, %v123_v62 }
  0xa1   :  { %1701 = vmatmul.msk.f32.gmra.mxu3 %vm190_vm1, %v451_v63  ;;  %v165_v1 = vmax.f32 %v124_v0, 0.0 }
  0xa3   :  { %1670 = vmatmul.msk.f32.gmra.mxu1 %vm190_vm1, %v165_v1 }
  0xa4   :  { %v410_v2 = vpop.f32.mrf.mxu2 }
  0xa5   :  { %v411_v3 = vadd.f32 %v2123_v44, %v410_v2 }
  0xa6   :  { %v126_v4 = vpop.f32.mrf.mxu0 }
  0xa7   :  { %v452_v5 = vmax.f32 %v411_v3, 0.0  ;;  %v127_v6 = vadd.f32 %v2123_v44, %v126_v4 }
  0xa9   :  { %1702 = vmatmul.msk.f32.gmra.mxu3 %vm190_vm1, %v452_v5  ;;  %v166_v7 = vmax.f32 %v127_v6, 0.0 }
  0xab   :  { %1671 = vmatmul.msk.f32.gmra.mxu1 %vm190_vm1, %v166_v7 }
  0xac   :  { %v413_v8 = vpop.f32.mrf.mxu2 }
  0xad   :  { %v414_v9 = vadd.f32 %v2123_v44, %v413_v8 }
  0xae   :  { %v129_v10 = vpop.f32.mrf.mxu0 }
  0xaf   :  { %v453_v11 = vmax.f32 %v414_v9, 0.0  ;;  %v130_v12 = vadd.f32 %v2123_v44, %v129_v10 }
  0xb1   :  { %1703 = vmatmul.msk.f32.gmra.mxu3 %vm190_vm1, %v453_v11  ;;  %v167_v13 = vmax.f32 %v130_v12, 0.0 }
  0xb3   :  { %1672 = vmatmul.msk.f32.gmra.mxu1 %vm190_vm1, %v167_v13  ;;  %v2191_v13 = vld [vmem:[%s3151_s5] ss:$0 sm:$0xff]  ;;  %s1640_s5 = sshll.u32 %s1920_s3, 4  ;;  %s1641_s5 = int_to_ptr.vmem [resolvable:$true] %s1640_s5 }
  0xb4   :  { %v416_v14 = vpop.f32.mrf.mxu2 }
  0xb5   :  { %v417_v15 = vadd.f32 %v2123_v44, %v416_v14 }
  0xb6   :  { %v132_v16 = vpop.f32.mrf.mxu0 }
  0xb7   :  { %v454_v17 = vmax.f32 %v417_v15, 0.0  ;;  %v133_v18 = vadd.f32 %v2123_v44, %v132_v16 }
  0xb9   :  { %1704 = vmatmul.msk.f32.gmra.mxu3 %vm190_vm1, %v454_v17  ;;  %v168_v19 = vmax.f32 %v133_v18, 0.0 }
  0xbb   :  { %1673 = vmatmul.msk.f32.gmra.mxu1 %vm190_vm1, %v168_v19 }
  0xbc   :  { %v419_v20 = vpop.f32.mrf.mxu2 }
  0xbd   :  { %v420_v21 = vadd.f32 %v2123_v44, %v419_v20 }
  0xbe   :  { %v135_v22 = vpop.f32.mrf.mxu0 }
  0xbf   :  { %v455_v23 = vmax.f32 %v420_v21, 0.0  ;;  %v136_v24 = vadd.f32 %v2123_v44, %v135_v22 }
  0xc1   :  { %1705 = vmatmul.msk.f32.gmra.mxu3 %vm190_vm1, %v455_v23  ;;  %v169_v25 = vmax.f32 %v136_v24, 0.0 }
  0xc3   :  { %1674 = vmatmul.msk.f32.gmra.mxu1 %vm190_vm1, %v169_v25 }
  0xc4   :  { %v422_v26 = vpop.f32.mrf.mxu2 }
  0xc5   :  { %v423_v27 = vadd.f32 %v2123_v44, %v422_v26 }
  0xc6   :  { %v138_v28 = vpop.f32.mrf.mxu0 }
  0xc7   :  { %v456_v29 = vmax.f32 %v423_v27, 0.0  ;;  %v139_v30 = vadd.f32 %v2123_v44, %v138_v28 }
  0xc9   :  { %1706 = vmatmul.msk.f32.gmra.mxu3 %vm190_vm1, %v456_v29  ;;  %v170_v31 = vmax.f32 %v139_v30, 0.0 }
  0xcb   :  { %1675 = vmatmul.msk.f32.gmra.mxu1 %vm190_vm1, %v170_v31 }
  0xcc   :  { %v425_v32 = vpop.f32.mrf.mxu2 }
  0xcd   :  { %v426_v33 = vadd.f32 %v2123_v44, %v425_v32 }
  0xce   :  { %v141_v34 = vpop.f32.mrf.mxu0 }
  0xcf   :  { %v457_v35 = vmax.f32 %v426_v33, 0.0  ;;  %v142_v36 = vadd.f32 %v2123_v44, %v141_v34 }
  0xd1   :  { %1707 = vmatmul.msk.f32.gmra.mxu3 %vm190_vm1, %v457_v35  ;;  %v171_v37 = vmax.f32 %v142_v36, 0.0 }
  0xd3   :  { %1676 = vmatmul.msk.f32.gmra.mxu1 %vm190_vm1, %v171_v37 }
  0xd4   :  { %v428_v38 = vpop.f32.mrf.mxu2 }
  0xd5   :  { %v429_v39 = vadd.f32 %v2123_v44, %v428_v38 }
  0xd6   :  { %v144_v40 = vpop.f32.mrf.mxu0 }
  0xd7   :  { %v458_v41 = vmax.f32 %v429_v39, 0.0  ;;  %v145_v42 = vadd.f32 %v2123_v44, %v144_v40 }
  0xd9   :  { %1708 = vmatmul.msk.f32.gmra.mxu3 %vm190_vm1, %v458_v41  ;;  %v172_v43 = vmax.f32 %v145_v42, 0.0 }
  0xdb   :  { %1677 = vmatmul.msk.f32.gmra.mxu1 %vm190_vm1, %v172_v43 }
  0xdc   :  { %v431_v45 = vpop.f32.mrf.mxu2 }
  0xdd   :  { %v432_v46 = vadd.f32 %v2123_v44, %v431_v45 }
  0xde   :  { %v147_v47 = vpop.f32.mrf.mxu0 }
  0xdf   :  { %v459_v48 = vmax.f32 %v432_v46, 0.0  ;;  %v148_v49 = vadd.f32 %v2123_v44, %v147_v47 }
  0xe1   :  { %1709 = vmatmul.msk.f32.gmra.mxu3 %vm190_vm1, %v459_v48  ;;  %v173_v50 = vmax.f32 %v148_v49, 0.0 }
  0xe3   :  { %1678 = vmatmul.msk.f32.gmra.mxu1 %vm190_vm1, %v173_v50 }
  0xe4   :  { %v434_v51 = vpop.f32.mrf.mxu2 }
  0xe5   :  { %v435_v52 = vadd.f32 %v2123_v44, %v434_v51 }
  0xe6   :  { %v150_v53 = vpop.f32.mrf.mxu0 }
  0xe7   :  { %v460_v54 = vmax.f32 %v435_v52, 0.0  ;;  %v151_v55 = vadd.f32 %v2123_v44, %v150_v53 }
  0xe9   :  { %1710 = vmatmul.msk.f32.gmra.mxu3 %vm190_vm1, %v460_v54  ;;  %v174_v56 = vmax.f32 %v151_v55, 0.0 }
  0xeb   :  { %1679 = vmatmul.msk.f32.gmra.mxu1 %vm190_vm1, %v174_v56 }
  0xec   :  { %v437_v57 = vpop.f32.mrf.mxu2 }
  0xed   :  { %v438_v58 = vadd.f32 %v2123_v44, %v437_v57 }
  0xee   :  { %v153_v59 = vpop.f32.mrf.mxu0 }
  0xef   :  { %v461_v60 = vmax.f32 %v438_v58, 0.0  ;;  %v154_v61 = vadd.f32 %v2123_v44, %v153_v59 }
  0xf1   :  { %1711 = vmatmul.msk.f32.gmra.mxu3 %vm190_vm1, %v461_v60  ;;  %v175_v62 = vmax.f32 %v154_v61, 0.0 }
  0xf3   :  { %1680 = vmatmul.msk.f32.gmra.mxu1 %vm190_vm1, %v175_v62 }
  0xf4   :  { %v440_v63 = vpop.f32.mrf.mxu2 }
  0xf5   :  { %v441_v0 = vadd.f32 %v2123_v44, %v440_v63 }
  0xf6   :  { %v156_v1 = vpop.f32.mrf.mxu0 }
  0xf7   :  { %v462_v2 = vmax.f32 %v441_v0, 0.0  ;;  %v157_v3 = vadd.f32 %v2123_v44, %v156_v1 }
  0xf9   :  { %1712 = vmatmul.msk.f32.gmra.mxu3 %vm190_vm1, %v462_v2  ;;  %v176_v4 = vmax.f32 %v157_v3, 0.0 }
  0xfb   :  { %1681 = vmatmul.msk.f32.gmra.mxu1 %vm190_vm1, %v176_v4 }
  0xfc   :  { %v443_v5 = vpop.f32.mrf.mxu2 }
  0xfd   :  { %v444_v6 = vadd.f32 %v2123_v44, %v443_v5 }
  0xfe   :  { %v159_v7 = vpop.f32.mrf.mxu0 }
  0xff   :  { %v463_v8 = vmax.f32 %v444_v6, 0.0  ;;  %v160_v9 = vadd.f32 %v2123_v44, %v159_v7 }
 0x101   :  { %1713 = vmatmul.msk.f32.gmra.mxu3 %vm190_vm1, %v463_v8  ;;  %v177_v10 = vmax.f32 %v160_v9, 0.0 }
 0x103   :  { %1682 = vmatmul.msk.f32.gmra.mxu1 %vm190_vm1, %v177_v10 }
 0x104   :  { %v446_v11 = vpop.f32.mrf.mxu2 }
 0x105   :  { %v447_v12 = vadd.f32 %v2123_v44, %v446_v11 }
 0x107   :  { %v464_v14 = vmax.f32 %v447_v12, 0.0 }
 0x108   :  { %v256_v15 = vpop.f32.mrf.mxu1 }
 0x109   :  { %v257_v16 = vadd.f32 %v2191_v13, %v256_v15  ;;  %1714 = vmatmul.msk.f32.gmra.mxu3 %vm190_vm1, %v464_v14 }
 0x10b   :  { %v304_v17 = vmax.f32 %v257_v16, 0.0 }
 0x10d   :  { %v658_v18 = vmul.f32 %v304_v17, %v304_v17 }
 0x10f   :  { %v674_v19 = vsel %vm48_vm0, %v658_v18, 0.0 }
 0x110   :  { %v259_v20 = vpop.f32.mrf.mxu1  ;;  %675 = vadd.xlane.f32.xlu2 %v674_v19 }
 0x111   :  { %v260_v21 = vadd.f32 %v2191_v13, %v259_v20 }
 0x113   :  { %v305_v44 = vmax.f32 %v260_v21, 0.0 }
 0x114   :  { %v530_v22 = vpop.f32.mrf.mxu3 }
 0x115   :  { %v531_v23 = vadd.f32 %v2191_v13, %v530_v22  ;;  %v659_v24 = vmul.f32 %v305_v44, %v305_v44 }
 0x117   :  { %v578_v25 = vmax.f32 %v531_v23, 0.0  ;;  %v677_v26 = vsel %vm48_vm0, %v659_v24, 0.0 }
 0x118   :  { %678 = vadd.xlane.f32.xlu0 %v677_v26  ;;  %v262_v27 = vpop.f32.mrf.mxu1 }
 0x119   :  { %v722_v28 = vmul.f32 %v578_v25, %v578_v25  ;;  %v263_v29 = vadd.f32 %v2191_v13, %v262_v27  ;;  %v594_v31 = vmul.f32 %v578_v25, %v304_v17 }
 0x11b   :  { %v738_v30 = vsel %vm48_vm0, %v722_v28, 0.0  ;;  %v306_v34 = vmax.f32 %v263_v29, 0.0  ;;  %v610_v36 = vsel %vm48_vm0, %v594_v31, 0.0 }
 0x11c   :  { %v533_v32 = vpop.f32.mrf.mxu3  ;;  %739 = vadd.xlane.f32.xlu1 %v738_v30 }
 0x11d   :  { %v534_v33 = vadd.f32 %v2191_v13, %v533_v32  ;;  %v660_v40 = vmul.f32 %v306_v34, %v306_v34 }
 0x11f   :  { %v579_v35 = vmax.f32 %v534_v33, 0.0  ;;  %v680_v46 = vsel %vm48_vm0, %v660_v40, 0.0 }
 0x120   :  { %611 = vadd.xlane.f32.xlu0 %v610_v36  ;;  %v265_v37 = vpop.f32.mrf.mxu1 }
 0x121   :  { %v266_v38 = vadd.f32 %v2191_v13, %v265_v37  ;;  %v723_v39 = vmul.f32 %v579_v35, %v579_v35  ;;  %v595_v53 = vmul.f32 %v579_v35, %v305_v44 }
 0x123   :  { %v307_v41 = vmax.f32 %v266_v38, 0.0  ;;  %v741_v42 = vsel %vm48_vm0, %v723_v39, 0.0  ;;  %v613_v58 = vsel %vm48_vm0, %v595_v53, 0.0 }
 0x124   :  { %v536_v43 = vpop.f32.mrf.mxu3  ;;  %742 = vadd.xlane.f32.xlu2 %v741_v42 }
 0x125   :  { %v537_v45 = vadd.f32 %v2191_v13, %v536_v43  ;;  %v661_v47 = vmul.f32 %v307_v41, %v307_v41 }
 0x127   :  { %v580_v48 = vmax.f32 %v537_v45, 0.0  ;;  %v683_v51 = vsel %vm48_vm0, %v661_v47, 0.0 }
 0x128   :  { %681 = vadd.xlane.f32.xlu0 %v680_v46  ;;  %v268_v49 = vpop.f32.mrf.mxu1 }
 0x129   :  { %v596_v50 = vmul.f32 %v580_v48, %v306_v34  ;;  %v269_v55 = vadd.f32 %v2191_v13, %v268_v49  ;;  %v724_v59 = vmul.f32 %v580_v48, %v580_v48 }
 0x12b   :  { %v616_v52 = vsel %vm48_vm0, %v596_v50, 0.0  ;;  %v308_v61 = vmax.f32 %v269_v55, 0.0  ;;  %v744_v63 = vsel %vm48_vm0, %v724_v59, 0.0 }
 0x12c   :  { %v539_v54 = vpop.f32.mrf.mxu3  ;;  %617 = vadd.xlane.f32.xlu1 %v616_v52  ;;  %684 = vadd.xlane.f32.xlu2 %v683_v51 }
 0x12d   :  { %v540_v56 = vadd.f32 %v2191_v13, %v539_v54  ;;  %v662_v4 = vmul.f32 %v308_v61, %v308_v61 }
 0x12f   :  { %v581_v57 = vmax.f32 %v540_v56, 0.0  ;;  %v686_v8 = vsel %vm48_vm0, %v662_v4, 0.0 }
 0x130   :  { %614 = vadd.xlane.f32.xlu0 %v613_v58  ;;  %v271_v60 = vpop.f32.mrf.mxu1 }
 0x131   :  { %v272_v62 = vadd.f32 %v2191_v13, %v271_v60  ;;  %v725_v0 = vmul.f32 %v581_v57, %v581_v57  ;;  %v597_v17 = vmul.f32 %v581_v57, %v307_v41 }
 0x133   :  { %v309_v2 = vmax.f32 %v272_v62, 0.0  ;;  %v747_v6 = vsel %vm48_vm0, %v725_v0, 0.0  ;;  %v619_v44 = vsel %vm48_vm0, %v597_v17, 0.0 }
 0x134   :  { %v542_v1 = vpop.f32.mrf.mxu3  ;;  %745 = vadd.xlane.f32.xlu1 %v744_v63 }
 0x135   :  { %v543_v3 = vadd.f32 %v2191_v13, %v542_v1  ;;  %v663_v10 = vmul.f32 %v309_v2, %v309_v2 }
 0x137   :  { %v582_v5 = vmax.f32 %v543_v3, 0.0  ;;  %v689_v15 = vsel %vm48_vm0, %v663_v10, 0.0 }
 0x138   :  { %748 = vadd.xlane.f32.xlu0 %v747_v6  ;;  %v274_v7 = vpop.f32.mrf.mxu1 }
 0x139   :  { %v598_v9 = vmul.f32 %v582_v5, %v308_v61  ;;  %v275_v14 = vadd.f32 %v2191_v13, %v274_v7  ;;  %v726_v18 = vmul.f32 %v582_v5, %v582_v5 }
 0x13b   :  { %v622_v11 = vsel %vm48_vm0, %v598_v9, 0.0  ;;  %v310_v20 = vmax.f32 %v275_v14, 0.0  ;;  %v750_v22 = vsel %vm48_vm0, %v726_v18, 0.0 }
 0x13c   :  { %v545_v12 = vpop.f32.mrf.mxu3  ;;  %687 = vadd.xlane.f32.xlu1 %v686_v8  ;;  %623 = vadd.xlane.f32.xlu2 %v622_v11 }
 0x13d   :  { %v546_v16 = vadd.f32 %v2191_v13, %v545_v12  ;;  %v664_v26 = vmul.f32 %v310_v20, %v310_v20 }
 0x13f   :  { %v583_v21 = vmax.f32 %v546_v16, 0.0  ;;  %v692_v31 = vsel %vm48_vm0, %v664_v26, 0.0 }
 0x140   :  { %690 = vadd.xlane.f32.xlu0 %v689_v15  ;;  %v277_v19 = vpop.f32.mrf.mxu1 }
 0x141   :  { %v278_v24 = vadd.f32 %v2191_v13, %v277_v19  ;;  %v727_v28 = vmul.f32 %v583_v21, %v583_v21  ;;  %v599_v39 = vmul.f32 %v583_v21, %v309_v2 }
 0x143   :  { %v311_v30 = vmax.f32 %v278_v24, 0.0  ;;  %v753_v33 = vsel %vm48_vm0, %v727_v28, 0.0  ;;  %v625_v46 = vsel %vm48_vm0, %v599_v39, 0.0 }
 0x144   :  { %v548_v23 = vpop.f32.mrf.mxu3  ;;  %620 = vadd.xlane.f32.xlu1 %v619_v44  ;;  %751 = vadd.xlane.f32.xlu2 %v750_v22 }
 0x145   :  { %v549_v25 = vadd.f32 %v2191_v13, %v548_v23  ;;  %v665_v36 = vmul.f32 %v311_v30, %v311_v30 }
 0x147   :  { %v584_v27 = vmax.f32 %v549_v25, 0.0  ;;  %v695_v42 = vsel %vm48_vm0, %v665_v36, 0.0 }
 0x148   :  { %v280_v29 = vpop.f32.mrf.mxu1 }
 0x149   :  { %v600_v32 = vmul.f32 %v584_v27, %v310_v20  ;;  %v281_v37 = vadd.f32 %v2191_v13, %v280_v29  ;;  %v728_v41 = vmul.f32 %v584_v27, %v584_v27 }
 0x14b   :  { %v628_v34 = vsel %vm48_vm0, %v600_v32, 0.0  ;;  %v2231_v43 = vmax.f32 %v281_v37, 0.0  ;;  %v756_v48 = vsel %vm48_vm0, %v728_v41, 0.0 }
 0x14c   :  { %v551_v35 = vpop.f32.mrf.mxu3  ;;  %754 = vadd.xlane.f32.xlu1 %v753_v33  ;;  %693 = vadd.xlane.f32.xlu2 %v692_v31 }
 0x14d   :  { %629 = vadd.xlane.f32.xlu0 %v628_v34  ;;  %v552_v38 = vadd.f32 %v2191_v13, %v551_v35  ;;  %v666_v50 = vmul.f32 %v2231_v43, %v2231_v43 }
 0x14f   :  { %v585_v45 = vmax.f32 %v552_v38, 0.0  ;;  %v698_v56 = vsel %vm48_vm0, %v666_v50, 0.0 }
 0x150   :  { %v283_v40 = vpop.f32.mrf.mxu1 }
 0x151   :  { %v284_v49 = vadd.f32 %v2191_v13, %v283_v40  ;;  %v601_v52 = vmul.f32 %v585_v45, %v311_v30  ;;  %v729_v53 = vmul.f32 %v585_v45, %v585_v45 }
 0x153   :  { %v2239_v55 = vmax.f32 %v284_v49, 0.0  ;;  %v631_v58 = vsel %vm48_vm0, %v601_v52, 0.0  ;;  %v759_v59 = vsel %vm48_vm0, %v729_v53, 0.0 }
 0x154   :  { %v554_v47 = vpop.f32.mrf.mxu3  ;;  %696 = vadd.xlane.f32.xlu1 %v695_v42  ;;  %626 = vadd.xlane.f32.xlu2 %v625_v46 }
 0x155   :  { %757 = vadd.xlane.f32.xlu0 %v756_v48  ;;  %v555_v51 = vadd.f32 %v2191_v13, %v554_v47  ;;  %v667_v63 = vmul.f32 %v2239_v55, %v2239_v55 }
 0x157   :  { %v2242_v57 = vmax.f32 %v555_v51, 0.0  ;;  %v701_v5 = vsel %vm48_vm0, %v667_v63, 0.0 }
 0x158   :  { %v286_v54 = vpop.f32.mrf.mxu1 }
 0x159   :  { %v287_v61 = vadd.f32 %v2191_v13, %v286_v54  ;;  %v730_v1 = vmul.f32 %v2242_v57, %v2242_v57 }
 0x15b   :  { %v2254_v3 = vmax.f32 %v287_v61, 0.0  ;;  %v762_v8 = vsel %vm48_vm0, %v730_v1, 0.0 }
 0x15c   :  { %v557_v60 = vpop.f32.mrf.mxu3  ;;  %632 = vadd.xlane.f32.xlu1 %v631_v58  ;;  %760 = vadd.xlane.f32.xlu2 %v759_v59 }
 0x15d   :  { %v558_v62 = vadd.f32 %v2191_v13, %v557_v60  ;;  %699 = vadd.xlane.f32.xlu0 %v698_v56  ;;  %v668_v12 = vmul.f32 %v2254_v3, %v2254_v3 }
 0x15f   :  { %v2250_v0 = vmax.f32 %v558_v62, 0.0  ;;  %v704_v18 = vsel %vm48_vm0, %v668_v12, 0.0 }
 0x160   :  { %v289_v2 = vpop.f32.mrf.mxu1 }
 0x161   :  { %v290_v4 = vadd.f32 %v2191_v13, %v289_v2  ;;  %v731_v6 = vmul.f32 %v2250_v0, %v2250_v0 }
 0x163   :  { %v2260_v7 = vmax.f32 %v290_v4, 0.0  ;;  %v765_v9 = vsel %vm48_vm0, %v731_v6, 0.0 }
 0x164   :  { %v560_v10 = vpop.f32.mrf.mxu3  ;;  %763 = vadd.xlane.f32.xlu1 %v762_v8  ;;  %702 = vadd.xlane.f32.xlu2 %v701_v5 }
 0x165   :  { %v561_v11 = vadd.f32 %v2191_v13, %v560_v10  ;;  %766 = vadd.xlane.f32.xlu0 %v765_v9  ;;  %v669_v14 = vmul.f32 %v2260_v7, %v2260_v7  ;;  %v602_v9 = vmul.f32 %v2242_v57, %v2231_v43 }
 0x167   :  { %v2269_v15 = vmax.f32 %v561_v11, 0.0  ;;  %v707_v20 = vsel %vm48_vm0, %v669_v14, 0.0  ;;  %v603_v14 = vmul.f32 %v2250_v0, %v2239_v55 }
 0x168   :  { %v292_v16 = vpop.f32.mrf.mxu1 }
 0x169   :  { %v293_v17 = vadd.f32 %v2191_v13, %v292_v16  ;;  %v732_v19 = vmul.f32 %v2269_v15, %v2269_v15  ;;  %v637_v43 = vsel %vm48_vm0, %v603_v14, 0.0 }
 0x16b   :  { %v2276_v21 = vmax.f32 %v293_v17, 0.0  ;;  %v768_v44 = vsel %vm48_vm0, %v732_v19, 0.0 }
 0x16c   :  { %v563_v22 = vpop.f32.mrf.mxu3  ;;  %705 = vadd.xlane.f32.xlu1 %v704_v18  ;;  %769 = vadd.xlane.f32.xlu2 %v768_v44  ;;  %v634_v18 = vsel %vm48_vm0, %v602_v9, 0.0 }
 0x16d   :  { %v564_v23 = vadd.f32 %v2191_v13, %v563_v22  ;;  %708 = vadd.xlane.f32.xlu0 %v707_v20  ;;  %v670_v24 = vmul.f32 %v2276_v21, %v2276_v21 }
 0x16f   :  { %v2282_v25 = vmax.f32 %v564_v23, 0.0  ;;  %v710_v29 = vsel %vm48_vm0, %v670_v24, 0.0 }
 0x170   :  { %v295_v26 = vpop.f32.mrf.mxu1 }
 0x171   :  { %v296_v27 = vadd.f32 %v2191_v13, %v295_v26  ;;  %v733_v28 = vmul.f32 %v2282_v25, %v2282_v25  ;;  %v605_v0 = vmul.f32 %v2282_v25, %v2260_v7 }
 0x173   :  { %v2288_v30 = vmax.f32 %v296_v27, 0.0  ;;  %v771_v31 = vsel %vm48_vm0, %v733_v28, 0.0  ;;  %v604_v28 = vmul.f32 %v2269_v15, %v2254_v3  ;;  %v643_v25 = vsel %vm48_vm0, %v605_v0, 0.0 }
 0x174   :  { %v566_v32 = vpop.f32.mrf.mxu3  ;;  %772 = vadd.xlane.f32.xlu1 %v771_v31  ;;  %711 = vadd.xlane.f32.xlu2 %v710_v29 }
 0x175   :  { %v567_v33 = vadd.f32 %v2191_v13, %v566_v32  ;;  %v671_v34 = vmul.f32 %v2288_v30, %v2288_v30 }
 0x177   :  { %v2294_v35 = vmax.f32 %v567_v33, 0.0  ;;  %v713_v38 = vsel %vm48_vm0, %v671_v34, 0.0 }
 0x178   :  { %v298_v36 = vpop.f32.mrf.mxu1 }
 0x179   :  { %v299_v37 = vadd.f32 %v2191_v13, %v298_v36  ;;  %v734_v39 = vmul.f32 %v2294_v35, %v2294_v35  ;;  %v606_v27 = vmul.f32 %v2294_v35, %v2276_v21  ;;  %v640_v21 = vsel %vm48_vm0, %v604_v28, 0.0 }
 0x17b   :  { %v2300_v40 = vmax.f32 %v299_v37, 0.0  ;;  %v774_v41 = vsel %vm48_vm0, %v734_v39, 0.0  ;;  %v646_v34 = vsel %vm48_vm0, %v606_v27, 0.0 }
 0x17c   :  { %v569_v42 = vpop.f32.mrf.mxu3  ;;  %714 = vadd.xlane.f32.xlu1 %v713_v38  ;;  %775 = vadd.xlane.f32.xlu0 %v774_v41 }
 0x17d   :  { %v570_v45 = vadd.f32 %v2191_v13, %v569_v42  ;;  %v672_v46 = vmul.f32 %v2300_v40, %v2300_v40 }
 0x17f   :  { %v2306_v47 = vmax.f32 %v570_v45, 0.0  ;;  %v716_v51 = vsel %vm48_vm0, %v672_v46, 0.0 }
 0x180   :  { %v301_v48 = vpop.f32.mrf.mxu1 }
 0x181   :  { %v302_v49 = vadd.f32 %v2191_v13, %v301_v48  ;;  %v735_v50 = vmul.f32 %v2306_v47, %v2306_v47 }
 0x183   :  { %v2312_v52 = vpop.xlane.xlu2 %675  ;;  %v2314_v53 = vmax.f32 %v302_v49, 0.0  ;;  %v777_v54 = vsel %vm48_vm0, %v735_v50, 0.0 }
 0x184   :  { %1734 = vrsqrt.f32 %v2312_v52  ;;  %v572_v56 = vpop.f32.mrf.mxu3  ;;  %778 = vadd.xlane.f32.xlu2 %v777_v54  ;;  %717 = vadd.xlane.f32.xlu0 %v716_v51  ;;  %vm793_vm2 = vcmp.eq.f32.partialorder %v2312_v52, inf  ;;  %vm795_vm3 = vcmp.eq.f32.partialorder %v2312_v52, 0.0  ;;  %v796_v46 = vand.u32 2147483648, %v2312_v52 }
 0x185   :  { %v573_v58 = vadd.f32 %v2191_v13, %v572_v56  ;;  %v673_v59 = vmul.f32 %v2314_v53, %v2314_v53 }
 0x187   :  { %v592_v60 = vmax.f32 %v573_v58, 0.0  ;;  %v719_v62 = vsel %vm48_vm0, %v673_v59, 0.0 }
 0x189   :  { %v736_v61 = vmul.f32 %v592_v60, %v592_v60  ;;  %v608_v3 = vmul.f32 %v592_v60, %v2300_v40  ;;  %v607_v40 = vmul.f32 %v2306_v47, %v2288_v30 }
 0x18a   :  { %v1735_v63 = vpop.eup %1734 }
 0x18b   :  { %v787_v1 = vmul.f32 %v1735_v63, %v2312_v52  ;;  %v2323_v2 = vpop.xlane.xlu0 %678  ;;  %v780_v4 = vsel %vm48_vm0, %v736_v61, 0.0  ;;  %v652_v50 = vsel %vm48_vm0, %v608_v3, 0.0  ;;  %v649_v61 = vsel %vm48_vm0, %v607_v40, 0.0 }
 0x18c   :  { %1736 = vrsqrt.f32 %v2323_v2  ;;  %v575_v5 = vpop.f32.mrf.mxu3  ;;  %781 = vadd.xlane.f32.xlu1 %v780_v4  ;;  %720 = vadd.xlane.f32.xlu2 %v719_v62  ;;  %vm805_vm6 = vcmp.eq.f32.partialorder %v2323_v2, inf  ;;  %v808_v14 = vand.u32 2147483648, %v2323_v2  ;;  %vm807_vm7 = vcmp.eq.f32.partialorder %v2323_v2, 0.0 }
 0x18d   :  { %v788_v6 = vmul.f32 %v1735_v63, %v787_v1  ;;  %v576_v8 = vadd.f32 %v2191_v13, %v575_v5 }
 0x18f   :  { %v789_v10 = vmul.f32 0.5, %v788_v6  ;;  %v593_v11 = vmax.f32 %v576_v8, 0.0  ;;  %v2330_v12 = vpop.xlane.xlu1 %739 }
 0x190   :  { %1738 = vrsqrt.f32 %v2330_v12  ;;  %vm1001_vm4 = vcmp.eq.f32.partialorder %v2330_v12, inf  ;;  %vm1003_vm5 = vcmp.eq.f32.partialorder %v2330_v12, 0.0 }
 0x191   :  { %v737_v16 = vmul.f32 %v593_v11, %v593_v11  ;;  %v790_v19 = vsub.f32 1.5, %v789_v10  ;;  %v609_v45 = vmul.f32 %v593_v11, %v2314_v53 }
 0x192   :  { %v1737_v17 = vpop.eup %1736 }
 0x193   :  { %v799_v20 = vmul.f32 %v1737_v17, %v2323_v2  ;;  %v2337_v13 = vpop.xlane.xlu0 %611  ;;  %v783_v57 = vsel %vm48_vm0, %v737_v16, 0.0  ;;  %v791_v22 = vmul.f32 %v1735_v63, %v790_v19  ;;  %v655_v59 = vsel %vm48_vm0, %v609_v45, 0.0 }
 0x194   :  { %635 = vadd.xlane.f32.xlu1 %v634_v18  ;;  %638 = vadd.xlane.f32.xlu2 %v637_v43 }
 0x195   :  { %v800_v44 = vmul.f32 %v1737_v17, %v799_v20  ;;  %784 = vadd.xlane.f32.xlu0 %v783_v57  ;;  %v792_v32 = vmul.f32 %v791_v22, %v2312_v52 }
 0x196   :  { %v1739_v55 = vpop.eup %1738 }
 0x197   :  { %v801_v23 = vmul.f32 0.5, %v800_v44  ;;  %v995_v24 = vmul.f32 %v1739_v55, %v2330_v12  ;;  %v2344_v26 = vpop.xlane.xlu2 %742  ;;  %v794_v38 = vsel %vm793_vm2, %v2312_v52, %v792_v32  ;;  %v1004_v52 = vand.u32 2147483648, %v2330_v12 }
 0x198   :  { %1740 = vrsqrt.f32 %v2344_v26  ;;  %v797_v53 = vsel %vm795_vm3, %v796_v46, %v794_v38  ;;  %vm1013_vm8 = vcmp.eq.f32.partialorder %v2344_v26, inf  ;;  %v1016_v19 = vand.u32 2147483648, %v2344_v26 }
 0x199   :  { %v996_v29 = vmul.f32 %v1739_v55, %v995_v24  ;;  %v802_v31 = vsub.f32 1.5, %v801_v23  ;;  %v978_v62 = vadd.f32 1e-07, %v797_v53  ;;  %vm1015_vm9 = vcmp.eq.f32.partialorder %v2344_v26, 0.0 }
 0x19b   :  { %v997_v33 = vmul.f32 0.5, %v996_v29  ;;  %v2352_v7 = vpop.xlane.xlu0 %681  ;;  %v803_v36 = vmul.f32 %v1737_v17, %v802_v31 }
 0x19c   :  { %1742 = vrsqrt.f32 %v2352_v7  ;;  %644 = vadd.xlane.f32.xlu1 %v643_v25  ;;  %647 = vadd.xlane.f32.xlu2 %v646_v34  ;;  %vm817_vm10 = vcmp.eq.f32.partialorder %v2352_v7, inf  ;;  %vm819_vm11 = vcmp.eq.f32.partialorder %v2352_v7, 0.0 }
 0x19d   :  { %v998_v35 = vsub.f32 1.5, %v997_v33  ;;  %641 = vadd.xlane.f32.xlu0 %v640_v21  ;;  %v804_v54 = vmul.f32 %v803_v36, %v2323_v2 }
 0x19e   :  { %v1741_v15 = vpop.eup %1740 }
 0x19f   :  { %v999_v37 = vmul.f32 %v1739_v55, %v998_v35  ;;  %v1007_v39 = vmul.f32 %v1741_v15, %v2344_v26  ;;  %v2362_v41 = vpop.xlane.xlu1 %617  ;;  %v2364_v42 = vpop.xlane.xlu2 %684  ;;  %v806_v6 = vsel %vm805_vm6, %v2323_v2, %v804_v54  ;;  %v820_v54 = vand.u32 2147483648, %v2352_v7 }
 0x1a0   :  { %1744 = vrsqrt.f32 %v2364_v42  ;;  %v809_v18 = vsel %vm807_vm7, %v808_v14, %v806_v6  ;;  %vm829_vm14 = vcmp.eq.f32.partialorder %v2364_v42, inf  ;;  %vm831_vm15 = vcmp.eq.f32.partialorder %v2364_v42, 0.0 }
 0x1a1   :  { %v1000_v48 = vmul.f32 %v999_v37, %v2330_v12  ;;  %v1008_v49 = vmul.f32 %v1741_v15, %v1007_v39  ;;  %v979_v0 = vadd.f32 1e-07, %v809_v18  ;;  %v1570_v39 = vlaneseq }
 0x1a2   :  { %v1743_v51 = vpop.eup %1742 }
 0x1a3   :  { %v1002_v56 = vsel %vm1001_vm4, %v2330_v12, %v1000_v48  ;;  %v1009_v58 = vmul.f32 0.5, %v1008_v49  ;;  %v811_v30 = vmul.f32 %v1743_v51, %v2352_v7  ;;  %v2380_v47 = vpop.xlane.xlu0 %614  ;;  %v2445_v18 = vand.u32 127, %v1570_v39 }
 0x1a4   :  { %v1005_v60 = vsel %vm1003_vm5, %v1004_v52, %v1002_v56  ;;  %653 = vadd.xlane.f32.xlu1 %v652_v50  ;;  %656 = vadd.xlane.f32.xlu2 %v655_v59 }
 0x1a5   :  { %v1186_v63 = vadd.f32 1e-07, %v1005_v60  ;;  %v1010_v1 = vsub.f32 1.5, %v1009_v58  ;;  %v812_v4 = vmul.f32 %v1743_v51, %v811_v30  ;;  %650 = vadd.xlane.f32.xlu0 %v649_v61 }
 0x1a6   :  { %v1745_v5 = vpop.eup %1744 }
 0x1a7   :  { %v1202_v8 = vmul.f32 %v1186_v63, %v978_v62  ;;  %v1011_v9 = vmul.f32 %v1741_v15, %v1010_v1  ;;  %v813_v10 = vmul.f32 0.5, %v812_v4  ;;  %v823_v11 = vmul.f32 %v1745_v5, %v2364_v42  ;;  %v2387_v12 = vpop.xlane.xlu1 %745 }
 0x1a8   :  { %1746 = vrsqrt.f32 %v2387_v12  ;;  %vm1025_vm12 = vcmp.eq.f32.partialorder %v2387_v12, inf  ;;  %vm1027_vm13 = vcmp.eq.f32.partialorder %v2387_v12, 0.0  ;;  %v1028_v62 = vand.u32 2147483648, %v2387_v12 }
 0x1a9   :  { %1748 = vrcp.f32 %v1202_v8  ;;  %v1012_v16 = vmul.f32 %v1011_v9, %v2344_v26  ;;  %v824_v17 = vmul.f32 %v1745_v5, %v823_v11  ;;  %v814_v20 = vsub.f32 1.5, %v813_v10 }
 0x1aa   :  { %v832_v10 = vand.u32 2147483648, %v2364_v42 }
 0x1ab   :  { %v1014_v43 = vsel %vm1013_vm8, %v2344_v26, %v1012_v16  ;;  %v2397_v57 = vpop.xlane.xlu0 %748  ;;  %v825_v55 = vmul.f32 0.5, %v824_v17  ;;  %v815_v24 = vmul.f32 %v1743_v51, %v814_v20 }
 0x1ac   :  { %v1017_v44 = vsel %vm1015_vm9, %v1016_v19, %v1014_v43  ;;  %1750 = vrsqrt.f32 %v2397_v57  ;;  %vm1037_vm0 = vcmp.eq.f32.partialorder %v2397_v57, inf  ;;  %vm1039_vm1 = vcmp.eq.f32.partialorder %v2397_v57, 0.0 }
 0x1ad   :  { %v1187_v22 = vadd.f32 1e-07, %v1017_v44  ;;  %v826_v32 = vsub.f32 1.5, %v825_v55  ;;  %v816_v21 = vmul.f32 %v815_v24, %v2352_v7  ;;  %v1040_v55 = vand.u32 2147483648, %v2397_v57 }
 0x1ae   :  { %v1747_v23 = vpop.eup %1746 }
 0x1af   :  { %v1749_v2 = vpop.eup %1748  ;;  %v1203_v27 = vmul.f32 %v1187_v22, %v979_v0  ;;  %v1019_v28 = vmul.f32 %v1747_v23, %v2387_v12  ;;  %v2401_v29 = vpop.xlane.xlu1 %687  ;;  %v827_v36 = vmul.f32 %v1745_v5, %v826_v32  ;;  %v818_v46 = vsel %vm817_vm10, %v2352_v7, %v816_v21 }
 0x1b0   :  { %v2403_v31 = vpop.xlane.xlu2 %623  ;;  %v1234_v26 = vmul.f32 %v1749_v2, %v2337_v13  ;;  %1752 = vrsqrt.f32 %v2401_v29  ;;  %v821_v60 = vsel %vm819_vm11, %v820_v54, %v818_v46  ;;  %vm841_vm2 = vcmp.eq.f32.partialorder %v2401_v29, inf }
 0x1b1   :  { %1754 = vrcp.f32 %v1203_v27  ;;  %v1020_v33 = vmul.f32 %v1747_v23, %v1019_v28  ;;  %v828_v52 = vmul.f32 %v827_v36, %v2364_v42  ;;  %v980_v7 = vadd.f32 1e-07, %v821_v60 }
 0x1b2   :  { %v1751_v25 = vpop.eup %1750  ;;  %v1715_v34 = vmul.f32 -1.442695, %v1234_v26  ;;  %v2461_v27 = vadd.s32 4294967288, %v2445_v18  ;;  %vm843_vm3 = vcmp.eq.f32.partialorder %v2401_v29, 0.0  ;;  %vm1575_vm11 = vcmask 130112  }
 0x1b3   :  { %v1021_v35 = vmul.f32 0.5, %v1020_v33  ;;  %v1031_v3 = vmul.f32 %v1751_v25, %v2397_v57  ;;  %v2409_v15 = vpop.xlane.xlu0 %690  ;;  %v830_v9 = vsel %vm829_vm14, %v2364_v42, %v828_v52 }
 0x1b4   :  { %1756 = vpow2.f32 %v1715_v34  ;;  %v833_v44 = vsel %vm831_vm15, %v832_v10, %v830_v9 }
 0x1b5   :  { %v1022_v37 = vsub.f32 1.5, %v1021_v35  ;;  %v1032_v38 = vmul.f32 %v1751_v25, %v1031_v3  ;;  %1758 = vrsqrt.f32 %v2409_v15  ;;  %v981_v21 = vadd.f32 1e-07, %v833_v44 }
 0x1b6   :  { %v1753_v13 = vpop.eup %1752  ;;  %v844_v35 = vand.u32 2147483648, %v2401_v29 }
 0x1b7   :  { %v1755_v45 = vpop.eup %1754  ;;  %v1023_v40 = vmul.f32 %v1747_v23, %v1022_v37  ;;  %v1033_v48 = vmul.f32 0.5, %v1032_v38  ;;  %v835_v49 = vmul.f32 %v1753_v13, %v2401_v29  ;;  %v2416_v50 = vpop.xlane.xlu1 %620 }
 0x1b8   :  { %v2418_v51 = vpop.xlane.xlu2 %751  ;;  %v1235_v53 = vmul.f32 %v1755_v45, %v2380_v47 }
 0x1b9   :  { %1760 = vrsqrt.f32 %v2418_v51  ;;  %v1024_v56 = vmul.f32 %v1023_v40, %v2387_v12  ;;  %v1034_v58 = vsub.f32 1.5, %v1033_v48  ;;  %v836_v30 = vmul.f32 %v1753_v13, %v835_v49 }
 0x1ba   :  { %v1757_v59 = vpop.eup %1756  ;;  %v1716_v61 = vmul.f32 -1.442695, %v1235_v53  ;;  %vm1049_vm5 = vcmp.eq.f32.partialorder %v2418_v51, inf  ;;  %v1052_v38 = vand.u32 2147483648, %v2418_v51  ;;  %vm1051_vm8 = vcmp.eq.f32.partialorder %v2418_v51, 0.0 }
 0x1bb   :  { %v2430_v47 = vpop.eup %1758  ;;  %v2432_v63 = vadd.f32 1.0, %v1757_v59  ;;  %v1026_v1 = vsel %vm1025_vm12, %v2387_v12, %v1024_v56  ;;  %v1035_v4 = vmul.f32 %v1751_v25, %v1034_v58  ;;  %v837_v5 = vmul.f32 0.5, %v836_v30 }
 0x1bc   :  { %1762 = vpow2.f32 %v1716_v61  ;;  %v1029_v6 = vsel %vm1027_vm13, %v1028_v62, %v1026_v1  ;;  %v847_v8 = vmul.f32 %v2430_v47, %v2409_v15  ;;  %vm853_vm12 = vcmp.eq.f32.partialorder %v2409_v15, inf }
 0x1bd   :  { %1764 = vrcp.f32 %v2432_v63  ;;  %v1188_v14 = vadd.f32 1e-07, %v1029_v6  ;;  %v1036_v12 = vmul.f32 %v1035_v4, %v2397_v57  ;;  %v838_v16 = vsub.f32 1.5, %v837_v5 }
 0x1be   :  { %v848_v17 = vmul.f32 %v2430_v47, %v847_v8  ;;  %v1323_v24 = vand.u32 2147483647, %v2432_v63  ;;  %vm1319_vm4 = vweird.f32 %v2432_v63  ;;  %v1325_v45 = vand.u32 2147483648, %v2432_v63 }
 0x1bf   :  { %v2441_v11 = vpop.eup %1760  ;;  %v2450_v19 = vpop.xlane.xlu1 %754  ;;  %v1204_v20 = vmul.f32 %v1188_v14, %v980_v7  ;;  %v839_v43 = vmul.f32 %v1753_v13, %v838_v16  ;;  %v1038_v23 = vsel %vm1037_vm0, %v2397_v57, %v1036_v12 }
 0x1c0   :  { %v2453_v0 = vpop.xlane.xlu2 %693  ;;  %v849_v22 = vmul.f32 0.5, %v848_v17  ;;  %v1043_v2 = vmul.f32 %v2441_v11, %v2418_v51  ;;  %1766 = vrsqrt.f32 %v2450_v19  ;;  %v1041_v28 = vsel %vm1039_vm1, %v1040_v55, %v1038_v23  ;;  %v2486_v40 = vpop.xlane.xlu0 %629 }
 0x1c1   :  { %1768 = vrcp.f32 %v1204_v20  ;;  %v1189_v33 = vadd.f32 1e-07, %v1041_v28  ;;  %v840_v34 = vmul.f32 %v839_v43, %v2401_v29  ;;  %vm2480_vm7 = vcmp.eq.f32.partialorder %v1323_v24, 8.507059e+37 }
 0x1c2   :  { %v1763_v42 = vpop.eup %1762  ;;  %v1044_v57 = vmul.f32 %v2441_v11, %v1043_v2  ;;  %1770 = vrsqrt.f32 %v2453_v0  ;;  %v850_v3 = vsub.f32 1.5, %v849_v22  ;;  %vm1061_vm0 = vcmp.eq.f32.partialorder %v2450_v19, inf }
 0x1c3   :  { %v2463_v26 = vpop.eup %1764  ;;  %v2465_v32 = vadd.f32 1.0, %v1763_v42  ;;  %v1205_v37 = vmul.f32 %v1189_v33, %v981_v21  ;;  %v842_v53 = vsel %vm841_vm2, %v2401_v29, %v840_v34  ;;  %vm1063_vm1 = vcmp.eq.f32.partialorder %v2450_v19, 0.0 }
 0x1c4   :  { %v1315_v25 = vmul.f32 %v2463_v26, %v2432_v63  ;;  %vm1320_vm6 = vweird.f32 %v2463_v26  ;;  %v1045_v46 = vmul.f32 0.5, %v1044_v57  ;;  %v851_v59 = vmul.f32 %v2430_v47, %v850_v3 }
 0x1c5   :  { %1772 = vrcp.f32 %v2465_v32  ;;  %v1338_v58 = vand.u32 2147483647, %v2465_v32  ;;  %vm2508_vm9 = vmor %vm1319_vm4, %vm1320_vm6  ;;  %vm1334_vm10 = vweird.f32 %v2465_v32  ;;  %v1340_v9 = vand.u32 2147483648, %v2465_v32 }
 0x1c6   :  { %v1316_v36 = vsub.f32 1.0, %v1315_v25  ;;  %v1767_v13 = vpop.eup %1766  ;;  %1774 = vrcp.f32 %v1205_v37  ;;  %v1046_v60 = vsub.f32 1.5, %v1045_v46  ;;  %v845_v63 = vsel %vm843_vm3, %v844_v35, %v842_v53 }
 0x1c7   :  { %v2488_v48 = vpop.xlane.xlu1 %696  ;;  %v1769_v49 = vpop.eup %1768  ;;  %v1055_v52 = vmul.f32 %v1767_v13, %v2450_v19  ;;  %vm2524_vm13 = vcmp.eq.f32.partialorder %v1338_v58, 8.507059e+37  ;;  %v852_v20 = vmul.f32 %v851_v59, %v2409_v15  ;;  %v1341_v35 = vor.u32 1.1754944e-38, %v1340_v9 }
 0x1c8   :  { %v1317_v54 = vmul.f32 %v2463_v26, %v1316_v36  ;;  %v2495_v56 = vpop.eup %1770  ;;  %v1236_v30 = vmul.f32 %v1769_v49, %v2362_v41  ;;  %1776 = vrsqrt.f32 %v2488_v48  ;;  %v1326_v41 = vor.u32 1.1754944e-38, %v1325_v45  ;;  %v2535_v22 = vpop.xlane.xlu2 %626 }
 0x1c9   :  { %v1056_v62 = vmul.f32 %v1767_v13, %v1055_v52  ;;  %v859_v1 = vmul.f32 %v2495_v56, %v2453_v0  ;;  %v1047_v6 = vmul.f32 %v2441_v11, %v1046_v60  ;;  %v2540_v34 = vpop.xlane.xlu0 %757  ;;  %v854_v53 = vsel %vm853_vm12, %v2409_v15, %v852_v20 }
 0x1ca   :  { %v1318_v61 = vadd.f32 %v2463_v26, %v1317_v54  ;;  %v1717_v47 = vmul.f32 -1.442695, %v1236_v30  ;;  %v856_v30 = vand.u32 2147483648, %v2409_v15  ;;  %vm855_vm2 = vcmp.eq.f32.partialorder %v2409_v15, 0.0 }
 0x1cb   :  { %v1773_v4 = vpop.eup %1772  ;;  %v1057_v10 = vmul.f32 0.5, %v1056_v62  ;;  %v1048_v14 = vmul.f32 %v1047_v6, %v2418_v51  ;;  %v860_v12 = vmul.f32 %v2495_v56, %v859_v1  ;;  %v2576_v6 = vadd.s32 4294967280, %v2445_v18 }
 0x1cc   :  { %v1322_v8 = vsel %vm2508_vm9, %v2463_v26, %v1318_v61  ;;  %v1330_v7 = vmul.f32 %v1773_v4, %v2465_v32  ;;  %1778 = vpow2.f32 %v1717_v47  ;;  %v1775_v11 = vpop.eup %1774  ;;  %vm1335_vm14 = vweird.f32 %v1773_v4 }
 0x1cd   :  { %v1058_v43 = vsub.f32 1.5, %v1057_v10  ;;  %v1327_v44 = vsel %vm2480_vm7, %v1326_v41, %v1322_v8  ;;  %v1237_v29 = vmul.f32 %v1775_v11, %v2416_v50  ;;  %v1050_v55 = vsel %vm1049_vm5, %v2418_v51, %v1048_v14  ;;  %vm1336_vm15 = vmor %vm1334_vm10, %vm1335_vm14 }
 0x1ce   :  { %v1331_v16 = vsub.f32 1.0, %v1330_v7  ;;  %v1777_v23 = vpop.eup %1776  ;;  %v1053_v42 = vsel %vm1051_vm8, %v1052_v38, %v1050_v55  ;;  %v861_v28 = vmul.f32 0.5, %v860_v12  ;;  %v982_v26 = vadd.f32 1e-07, %v845_v63 }
 0x1cf   :  { %v1059_v24 = vmul.f32 %v1767_v13, %v1058_v43  ;;  %v1718_v33 = vmul.f32 -1.442695, %v1237_v29  ;;  %v1190_v57 = vadd.f32 1e-07, %v1053_v42  ;;  %v871_v25 = vmul.f32 %v1777_v23, %v2488_v48  ;;  %v2560_v52 = vpop.xlane.xlu1 %632 }
 0x1d0   :  { %v1332_v2 = vmul.f32 %v1773_v4, %v1331_v16  ;;  %v1572_v50 = vperm.slane %v1327_v44, %v2445_v18  ;;  %v862_v39 = vsub.f32 1.5, %v861_v28  ;;  %v1064_v32 = vand.u32 2147483648, %v2450_v19  ;;  %v2568_v61 = vpop.xlane.xlu2 %760 }
 0x1d1   :  { %v1060_v3 = vmul.f32 %v1059_v24, %v2450_v19  ;;  %1780 = vpow2.f32 %v1718_v33  ;;  %v1206_v51 = vmul.f32 %v1190_v57, %v982_v26  ;;  %v872_v37 = vmul.f32 %v1777_v23, %v871_v25  ;;  %v2573_v41 = vpop.xlane.xlu0 %699 }
 0x1d2   :  { %v1333_v21 = vadd.f32 %v1773_v4, %v1332_v2  ;;  %v1779_v36 = vpop.eup %1778  ;;  %v863_v60 = vmul.f32 %v2495_v56, %v862_v39  ;;  %v2582_v7 = vadd.s32 4294967272, %v2445_v18  ;;  %vm865_vm3 = vcmp.eq.f32.partialorder %v2453_v0, inf }
 0x1d3   :  { %v2548_v13 = vadd.f32 1.0, %v1779_v36  ;;  %v1062_v45 = vsel %vm1061_vm0, %v2450_v19, %v1060_v3  ;;  %1782 = vrcp.f32 %v1206_v51  ;;  %v873_v54 = vmul.f32 0.5, %v872_v37 }
 0x1d4   :  { %v1337_v38 = vsel %vm1336_vm15, %v1773_v4, %v1333_v21  ;;  %v1065_v58 = vsel %vm1063_vm1, %v1064_v32, %v1062_v45  ;;  %v864_v15 = vmul.f32 %v863_v60, %v2453_v0  ;;  %vm1579_vm4 = vcmask 195712  }
 0x1d5   :  { %v1342_v46 = vsel %vm2524_vm13, %v1341_v35, %v1337_v38  ;;  %1784 = vrcp.f32 %v2548_v13  ;;  %v874_v1 = vsub.f32 1.5, %v873_v54  ;;  %v1191_v4 = vadd.f32 1e-07, %v1065_v58 }
 0x1d6   :  { %v1574_v49 = vperm.slane %v1342_v46, %v2461_v27  ;;  %v857_v27 = vsel %vm855_vm2, %v856_v30, %v854_v53  ;;  %1786 = vrsqrt.f32 %v2540_v34  ;;  %v1353_v10 = vand.u32 2147483647, %v2548_v13 }
 0x1d7   :  { %v1781_v19 = vpop.eup %1780  ;;  %v983_v56 = vadd.f32 1e-07, %v857_v27  ;;  %vm867_vm5 = vcmp.eq.f32.partialorder %v2453_v0, 0.0  ;;  %v875_v63 = vmul.f32 %v1777_v23, %v874_v1  ;;  %v868_v16 = vand.u32 2147483648, %v2453_v0  ;;  %v2593_v44 = vpop.xlane.xlu1 %763 }
 0x1d8   :  { %v2564_v59 = vsel %vm1575_vm11, %v1574_v49, %v1572_v50  ;;  %v2570_v62 = vadd.f32 1.0, %v1781_v19  ;;  %vm877_vm6 = vcmp.eq.f32.partialorder %v2488_v48, inf  ;;  %v1355_v20 = vand.u32 2147483648, %v2548_v13  ;;  %v2607_v57 = vpop.xlane.xlu2 %702 }
 0x1d9   :  { %v1783_v5 = vpop.eup %1782  ;;  %v1207_v14 = vmul.f32 %v1191_v4, %v983_v56  ;;  %v880_v43 = vand.u32 2147483648, %v2488_v48  ;;  %vm879_vm8 = vcmp.eq.f32.partialorder %v2488_v48, 0.0  ;;  %vm1349_vm9 = vweird.f32 %v2548_v13 }
 0x1da   :  { %1788 = vrcp.f32 %v2570_v62  ;;  %v1238_v9 = vmul.f32 %v1783_v5, %v2403_v31  ;;  %v866_v31 = vsel %vm865_vm3, %v2453_v0, %v864_v15  ;;  %vm2598_vm10 = vcmp.eq.f32.partialorder %v1353_v10, 8.507059e+37  ;;  %v2614_v0 = vpop.xlane.xlu0 %766 }
 0x1db   :  { %v1785_v47 = vpop.eup %1784  ;;  %1790 = vrcp.f32 %v1207_v14  ;;  %v876_v42 = vmul.f32 %v875_v63, %v2488_v48  ;;  %v869_v26 = vsel %vm867_vm5, %v868_v16, %v866_v31  ;;  %vm1583_vm11 = vcmask 261312  }
 0x1dc   :  { %v1345_v8 = vmul.f32 %v1785_v47, %v2548_v13  ;;  %v1719_v11 = vmul.f32 -1.442695, %v1238_v9  ;;  %v1787_v17 = vpop.eup %1786  ;;  %vm1350_vm7 = vweird.f32 %v1785_v47  ;;  %v1356_v25 = vor.u32 1.1754944e-38, %v1355_v20 }
 0x1dd   :  { %v1067_v55 = vmul.f32 %v1787_v17, %v2540_v34  ;;  %vm1351_vm12 = vmor %vm1349_vm9, %vm1350_vm7  ;;  %v1368_v50 = vand.u32 2147483647, %v2570_v62  ;;  %v1370_v21 = vand.u32 2147483648, %v2570_v62  ;;  %v878_v38 = vsel %vm877_vm6, %v2488_v48, %v876_v42 }
 0x1de   :  { %v1346_v12 = vsub.f32 1.0, %v1345_v8  ;;  %1792 = vpow2.f32 %v1719_v11  ;;  %vm1364_vm14 = vweird.f32 %v2570_v62  ;;  %vm1073_vm15 = vcmp.eq.f32.partialorder %v2540_v34, inf }
 0x1df   :  { %1794 = vrsqrt.f32 %v2568_v61  ;;  %v1068_v33 = vmul.f32 %v1787_v17, %v1067_v55  ;;  %vm1369_vm1 = vcmp.eq.f32.partialorder %v1368_v50, 8.507059e+37  ;;  %v881_v27 = vsel %vm879_vm8, %v880_v43, %v878_v38 }
 0x1e0   :  { %v1347_v29 = vmul.f32 %v1785_v47, %v1346_v12  ;;  %v1789_v23 = vpop.eup %1788  ;;  %1796 = vrsqrt.f32 %v2573_v41  ;;  %vm1075_vm2 = vcmp.eq.f32.partialorder %v2540_v34, 0.0  ;;  %v1076_v15 = vand.u32 2147483648, %v2540_v34  ;;  %v2661_v43 = vpop.xlane.xlu2 %769 }
 0x1e1   :  { %v1360_v28 = vmul.f32 %v1789_v23, %v2570_v62  ;;  %v1069_v36 = vmul.f32 0.5, %v1068_v33  ;;  %1798 = vrsqrt.f32 %v2593_v44  ;;  %v1791_v51 = vpop.eup %1790  ;;  %vm1365_vm13 = vweird.f32 %v1789_v23  ;;  %v2637_v62 = vpop.xlane.xlu1 %705 }
 0x1e2   :  { %v1348_v24 = vadd.f32 %v1785_v47, %v1347_v29  ;;  %1800 = vrsqrt.f32 %v2607_v57  ;;  %v1239_v46 = vmul.f32 %v1791_v51, %v2535_v22  ;;  %vm1366_vm0 = vmor %vm1364_vm14, %vm1365_vm13  ;;  %v1371_v22 = vor.u32 1.1754944e-38, %v1370_v21  ;;  %v2681_v38 = vpop.xlane.xlu0 %708 }
 0x1e3   :  { %v1361_v3 = vsub.f32 1.0, %v1360_v28  ;;  %v1070_v32 = vsub.f32 1.5, %v1069_v36  ;;  %1802 = vrsqrt.f32 %v2614_v0  ;;  %v984_v14 = vadd.f32 1e-07, %v869_v26 }
 0x1e4   :  { %v1352_v35 = vsel %vm1351_vm12, %v1785_v47, %v1348_v24  ;;  %v1793_v13 = vpop.eup %1792  ;;  %v1720_v30 = vmul.f32 -1.442695, %v1239_v46  ;;  %v2655_v12 = vadd.s32 4294967264, %v2445_v18  ;;  %v2663_v29 = vadd.f32 1e-07, %v881_v27 }
 0x1e5   :  { %v1357_v37 = vsel %vm2598_vm10, %v1356_v25, %v1352_v35  ;;  %v1362_v39 = vmul.f32 %v1789_v23, %v1361_v3  ;;  %v1795_v49 = vpop.eup %1794  ;;  %v2625_v54 = vadd.f32 1.0, %v1793_v13  ;;  %v1071_v60 = vmul.f32 %v1787_v17, %v1070_v32 }
 0x1e6   :  { %v1578_v45 = vperm.slane %v1357_v37, %v2576_v6  ;;  %v2631_v19 = vpop.eup %1796  ;;  %v1079_v5 = vmul.f32 %v1795_v49, %v2568_v61  ;;  %v2666_v55 = vadd.s32 4294967256, %v2445_v18  ;;  %vm1085_vm3 = vcmp.eq.f32.partialorder %v2568_v61, inf }
 0x1e7   :  { %v1363_v53 = vadd.f32 %v1789_v23, %v1362_v39  ;;  %1804 = vrcp.f32 %v2625_v54  ;;  %v1799_v1 = vpop.eup %1798  ;;  %v883_v48 = vmul.f32 %v2631_v19, %v2573_v41  ;;  %v1383_v35 = vand.u32 2147483647, %v2625_v54 }
 0x1e8   :  { %v1580_v58 = vsel %vm1579_vm4, %v1578_v45, %v2564_v59  ;;  %1806 = vpow2.f32 %v1720_v30  ;;  %v1072_v59 = vmul.f32 %v1071_v60, %v2540_v34  ;;  %v2641_v47 = vpop.eup %1800  ;;  %v1080_v9 = vmul.f32 %v1795_v49, %v1079_v5 }
 0x1e9   :  { %v1367_v4 = vsel %vm1366_vm0, %v1789_v23, %v1363_v53  ;;  %v1091_v10 = vmul.f32 %v1799_v1, %v2593_v44  ;;  %v2652_v63 = vpop.eup %1802  ;;  %v884_v16 = vmul.f32 %v2631_v19, %v883_v48  ;;  %v895_v2 = vmul.f32 %v2641_v47, %v2607_v57  ;;  %v2683_v13 = vpop.xlane.xlu1 %772 }
 0x1ea   :  { %v1372_v6 = vsel %vm1369_vm1, %v1371_v22, %v1367_v4  ;;  %v1074_v8 = vsel %vm1073_vm15, %v2540_v34, %v1072_v59  ;;  %v1081_v20 = vmul.f32 0.5, %v1080_v9  ;;  %vm1587_vm4 = vcmask 326912  }
 0x1eb   :  { %v1582_v56 = vperm.slane %v1372_v6, %v2582_v7  ;;  %v1077_v11 = vsel %vm1075_vm2, %v1076_v15, %v1074_v8  ;;  %v1092_v31 = vmul.f32 %v1799_v1, %v1091_v10  ;;  %v885_v23 = vmul.f32 0.5, %v884_v16 }
 0x1ec   :  { %v1192_v7 = vadd.f32 1e-07, %v1077_v11  ;;  %v1082_v26 = vsub.f32 1.5, %v1081_v20  ;;  %v1103_v50 = vmul.f32 %v2652_v63, %v2614_v0  ;;  %1808 = vrsqrt.f32 %v2637_v62 }
 0x1ed   :  { %v2659_v17 = vsel %vm1583_vm11, %v1582_v56, %v1580_v58  ;;  %v1805_v34 = vpop.eup %1804  ;;  %v1093_v25 = vmul.f32 0.5, %v1092_v31  ;;  %v1385_v36 = vand.u32 2147483648, %v2625_v54  ;;  %v886_v51 = vsub.f32 1.5, %v885_v23 }
 0x1ee   :  { %v1807_v42 = vpop.eup %1806  ;;  %v1375_v24 = vmul.f32 %v1805_v34, %v2625_v54  ;;  %v1208_v28 = vmul.f32 %v1192_v7, %v984_v14  ;;  %v1083_v3 = vmul.f32 %v1795_v49, %v1082_v26  ;;  %v896_v37 = vmul.f32 %v2641_v47, %v895_v2 }
 0x1ef   :  { %v2672_v33 = vadd.f32 1.0, %v1807_v42  ;;  %vm1380_vm5 = vweird.f32 %v1805_v34  ;;  %v1094_v46 = vsub.f32 1.5, %v1093_v25  ;;  %vm1087_vm6 = vcmp.eq.f32.partialorder %v2568_v61, 0.0  ;;  %v2715_v16 = vpop.xlane.xlu0 %775 }
 0x1f0   :  { %v1376_v21 = vsub.f32 1.0, %v1375_v24  ;;  %1810 = vrcp.f32 %v1208_v28  ;;  %v1084_v45 = vmul.f32 %v1083_v3, %v2568_v61  ;;  %v1088_v32 = vand.u32 2147483648, %v2568_v61 }
 0x1f1   :  { %1812 = vrcp.f32 %v2672_v33  ;;  %v1104_v49 = vmul.f32 %v2652_v63, %v1103_v50  ;;  %vm1379_vm7 = vweird.f32 %v2625_v54  ;;  %v1095_v58 = vmul.f32 %v1799_v1, %v1094_v46  ;;  %v2699_v54 = vpop.xlane.xlu2 %711  ;;  %v2724_v42 = vpop.xlane.xlu1 %714 }
 0x1f2   :  { %v1377_v39 = vmul.f32 %v1805_v34, %v1376_v21  ;;  %1814 = vrsqrt.f32 %v2661_v43  ;;  %vm1097_vm8 = vcmp.eq.f32.partialorder %v2593_v44, inf  ;;  %v2692_v30 = vpop.eup %1808  ;;  %vm1381_vm9 = vmor %vm1379_vm7, %vm1380_vm5  ;;  %v1386_v60 = vor.u32 1.1754944e-38, %v1385_v36 }
 0x1f3   :  { %v1086_v22 = vsel %vm1085_vm3, %v2568_v61, %v1084_v45  ;;  %v887_v27 = vmul.f32 %v2631_v19, %v886_v51  ;;  %vm1099_vm10 = vcmp.eq.f32.partialorder %v2593_v44, 0.0  ;;  %vm1384_vm11 = vcmp.eq.f32.partialorder %v1383_v35, 8.507059e+37 }
 0x1f4   :  { %v1378_v53 = vadd.f32 %v1805_v34, %v1377_v39  ;;  %v897_v5 = vmul.f32 0.5, %v896_v37  ;;  %v1100_v1 = vand.u32 2147483648, %v2593_v44  ;;  %v1096_v56 = vmul.f32 %v1095_v58, %v2593_v44 }
 0x1f5   :  { %v1105_v8 = vmul.f32 0.5, %v1104_v49  ;;  %v1089_v10 = vsel %vm1087_vm6, %v1088_v32, %v1086_v22  ;;  %vm889_vm12 = vcmp.eq.f32.partialorder %v2573_v41, inf  ;;  %vm1591_vm13 = vcmask 392512  }
 0x1f6   :  { %v1811_v4 = vpop.eup %1810  ;;  %v1382_v59 = vsel %vm1381_vm9, %v1805_v34, %v1378_v53  ;;  %v1398_v11 = vand.u32 2147483647, %v2672_v33  ;;  %vm891_vm14 = vcmp.eq.f32.partialorder %v2573_v41, 0.0  ;;  %v1400_v20 = vand.u32 2147483648, %v2672_v33 }
 0x1f7   :  { %v1813_v6 = vpop.eup %1812  ;;  %v1387_v15 = vsel %vm1384_vm11, %v1386_v60, %v1382_v59  ;;  %v2703_v48 = vmul.f32 %v1811_v4, %v2486_v40  ;;  %v888_v40 = vmul.f32 %v887_v27, %v2573_v41  ;;  %v907_v31 = vmul.f32 %v2692_v30, %v2637_v62  ;;  %v2764_v22 = vpop.xlane.xlu0 %717 }
 0x1f8   :  { %v1586_v19 = vperm.slane %v1387_v15, %v2655_v12  ;;  %v1390_v9 = vmul.f32 %v1813_v6, %v2672_v33  ;;  %v2711_v14 = vpop.eup %1814  ;;  %v892_v12 = vand.u32 2147483648, %v2573_v41  ;;  %v1193_v34 = vadd.f32 1e-07, %v1089_v10 }
 0x1f9   :  { %v898_v23 = vsub.f32 1.5, %v897_v5  ;;  %v1106_v2 = vsub.f32 1.5, %v1105_v8  ;;  %v1098_v24 = vsel %vm1097_vm8, %v2593_v44, %v1096_v56  ;;  %vm1395_vm15 = vweird.f32 %v1813_v6  ;;  %v2743_v35 = vpop.xlane.xlu2 %778 }
 0x1fa   :  { %v1391_v7 = vsub.f32 1.0, %v1390_v9  ;;  %v1588_v61 = vsel %vm1587_vm4, %v1586_v19, %v2659_v17  ;;  %v1115_v26 = vmul.f32 %v2711_v14, %v2661_v43  ;;  %1816 = vrsqrt.f32 %v2681_v38 }
 0x1fb   :  { %vm1394_vm0 = vweird.f32 %v2672_v33  ;;  %vm2733_vm1 = vcmp.eq.f32.partialorder %v1398_v11, 8.507059e+37  ;;  %1818 = vrsqrt.f32 %v2683_v13  ;;  %v890_v25 = vsel %vm889_vm12, %v2573_v41, %v888_v40 }
 0x1fc   :  { %v1392_v28 = vmul.f32 %v1813_v6, %v1391_v7  ;;  %v908_v21 = vmul.f32 %v2692_v30, %v907_v31  ;;  %1820 = vrsqrt.f32 %v2699_v54  ;;  %v1101_v33 = vsel %vm1099_vm10, %v1100_v1, %v1098_v24  ;;  %vm1396_vm2 = vmor %vm1394_vm0, %vm1395_vm15 }
 0x1fd   :  { %v1401_v3 = vor.u32 1.1754944e-38, %v1400_v20  ;;  %v1209_v36 = vmul.f32 %v1193_v34, %v2663_v29  ;;  %v899_v51 = vmul.f32 %v2641_v47, %v898_v23  ;;  %v1107_v37 = vmul.f32 %v2652_v63, %v1106_v2 }
 0x1fe   :  { %v1393_v50 = vadd.f32 %v1813_v6, %v1392_v28  ;;  %v1116_v45 = vmul.f32 %v2711_v14, %v1115_v26  ;;  %1822 = vrsqrt.f32 %v2715_v16  ;;  %v893_v46 = vsel %vm891_vm14, %v892_v12, %v890_v25 }
 0x1ff   :  { %v1194_v32 = vadd.f32 1e-07, %v1101_v33  ;;  %vm901_vm3 = vcmp.eq.f32.partialorder %v2607_v57, inf  ;;  %vm903_vm4 = vcmp.eq.f32.partialorder %v2607_v57, 0.0  ;;  %v909_v63 = vmul.f32 0.5, %v908_v21  ;;  %v2766_v27 = vpop.xlane.xlu1 %781 }
 0x200   :  { %v1397_v39 = vsel %vm1396_vm2, %v1813_v6, %v1393_v50  ;;  %v1817_v29 = vpop.eup %1816  ;;  %1824 = vrsqrt.f32 %v2724_v42  ;;  %v904_v49 = vand.u32 2147483648, %v2607_v57  ;;  %v900_v41 = vmul.f32 %v899_v51, %v2607_v57 }
 0x201   :  { %v1402_v44 = vsel %vm2733_vm1, %v1401_v3, %v1397_v39  ;;  %v1819_v53 = vpop.eup %1818  ;;  %v1108_v58 = vmul.f32 %v1107_v37, %v2614_v0  ;;  %v919_v60 = vmul.f32 %v1817_v29, %v2681_v38  ;;  %v986_v4 = vadd.f32 1e-07, %v893_v46  ;;  %v2783_v31 = vpop.xlane.xlu2 %720 }
 0x202   :  { %v1590_v47 = vperm.slane %v1402_v44, %v2666_v55  ;;  %v1821_v59 = vpop.eup %1820  ;;  %1826 = vrcp.f32 %v1209_v36  ;;  %v1117_v5 = vmul.f32 0.5, %v1116_v45  ;;  %v1127_v1 = vmul.f32 %v1819_v53, %v2683_v13 }
 0x203   :  { %v920_v6 = vmul.f32 %v1817_v29, %v919_v60  ;;  %v931_v15 = vmul.f32 %v1821_v59, %v2699_v54  ;;  %1828 = vrsqrt.f32 %v2743_v35  ;;  %v1210_v56 = vmul.f32 %v1194_v32, %v986_v4 }
 0x204   :  { %v2769_v55 = vsel %vm1591_vm13, %v1590_v47, %v1588_v61  ;;  %v1823_v8 = vpop.eup %1822  ;;  %v910_v19 = vsub.f32 1.5, %v909_v63  ;;  %v1128_v9 = vmul.f32 %v1819_v53, %v1127_v1  ;;  %1830 = vrsqrt.f32 %v2764_v22 }
 0x205   :  { %vm1109_vm5 = vcmp.eq.f32.partialorder %v2614_v0, inf  ;;  %v921_v10 = vmul.f32 0.5, %v920_v6  ;;  %v932_v11 = vmul.f32 %v1821_v59, %v931_v15  ;;  %v1139_v40 = vmul.f32 %v1823_v8, %v2715_v16 }
 0x206   :  { %v902_v12 = vsel %vm901_vm3, %v2607_v57, %v900_v41  ;;  %v2780_v7 = vpop.eup %1824  ;;  %v1118_v20 = vsub.f32 1.5, %v1117_v5  ;;  %v1129_v61 = vmul.f32 0.5, %v1128_v9  ;;  %1832 = vrsqrt.f32 %v2766_v27 }
 0x207   :  { %v1110_v34 = vsel %vm1109_vm5, %v2614_v0, %v1108_v58  ;;  %v933_v23 = vmul.f32 0.5, %v932_v11  ;;  %v1140_v2 = vmul.f32 %v1823_v8, %v1139_v40  ;;  %1834 = vrcp.f32 %v1210_v56  ;;  %v636_v46 = vpop.xlane.xlu1 %635 }
 0x208   :  { %v1112_v24 = vand.u32 2147483648, %v2614_v0  ;;  %v1827_v28 = vpop.eup %1826  ;;  %v922_v26 = vsub.f32 1.5, %v921_v10  ;;  %v1130_v17 = vsub.f32 1.5, %v1129_v61  ;;  %v905_v25 = vsel %vm903_vm4, %v904_v49, %v902_v12 }
 0x209   :  { %vm1111_vm6 = vcmp.eq.f32.partialorder %v2614_v0, 0.0  ;;  %v2790_v50 = vpop.eup %1828  ;;  %v943_v21 = vmul.f32 %v2780_v7, %v2724_v42  ;;  %v1141_v33 = vmul.f32 0.5, %v1140_v2  ;;  %1836 = vrsqrt.f32 %v2783_v31 }
 0x20a   :  { %v1113_v3 = vsel %vm1111_vm6, %v1112_v24, %v1110_v34  ;;  %v2795_v36 = vpop.eup %1830  ;;  %v1721_v51 = vmul.f32 -1.442695, %v2703_v48  ;;  %v911_v37 = vmul.f32 %v2692_v30, %v910_v19  ;;  %v1131_v39 = vmul.f32 %v1819_v53, %v1130_v17 }
 0x20b   :  { %v934_v57 = vsub.f32 1.5, %v933_v23  ;;  %v1241_v45 = vmul.f32 %v1827_v28, %v2560_v52  ;;  %v1119_v0 = vmul.f32 %v2711_v14, %v1118_v20  ;;  %v923_v32 = vmul.f32 %v1817_v29, %v922_v26  ;;  %v2829_v20 = vpop.xlane.xlu0 %784 }
 0x20c   :  { %v2801_v44 = vpop.eup %1832  ;;  %v1151_v47 = vmul.f32 %v2790_v50, %v2743_v35  ;;  %v987_v63 = vadd.f32 1e-07, %v905_v25  ;;  %v1195_v49 = vadd.f32 1e-07, %v1113_v3  ;;  %v1132_v48 = vmul.f32 %v1131_v39, %v2683_v13  ;;  %v639_v3 = vpop.xlane.xlu2 %638 }
 0x20d   :  { %v1835_v41 = vpop.eup %1834  ;;  %v944_v30 = vmul.f32 %v2780_v7, %v943_v21  ;;  %v1142_v53 = vsub.f32 1.5, %v1141_v33  ;;  %v955_v52 = vmul.f32 %v2795_v36, %v2764_v22  ;;  %1838 = vpow2.f32 %v1721_v51 }
 0x20e   :  { %v2810_v14 = vmul.f32 %v911_v37, %v2637_v62  ;;  %v935_v58 = vmul.f32 %v1821_v59, %v934_v57  ;;  %v1242_v29 = vmul.f32 %v1835_v41, %v636_v46  ;;  %v1722_v4 = vmul.f32 -1.442695, %v1241_v45 }
 0x20f   :  { %v2812_v60 = vpop.eup %1836  ;;  %v2815_v5 = vmul.f32 %v1119_v0, %v2661_v43  ;;  %v1163_v1 = vmul.f32 %v2801_v44, %v2766_v27  ;;  %vm1133_vm7 = vcmp.eq.f32.partialorder %v2683_v13, inf  ;;  %v924_v6 = vmul.f32 %v923_v32, %v2681_v38 }
 0x210   :  { %v1152_v15 = vmul.f32 %v2790_v50, %v1151_v47  ;;  %v1723_v56 = vmul.f32 -1.442695, %v1242_v29  ;;  %v1211_v19 = vmul.f32 %v1195_v49, %v987_v63  ;;  %v2822_v9 = vmul.f32 0.5, %v944_v30 }
 0x211   :  { %v1143_v59 = vmul.f32 %v1823_v8, %v1142_v53  ;;  %v956_v10 = vmul.f32 %v2795_v36, %v955_v52  ;;  %v1134_v11 = vsel %vm1133_vm7, %v2683_v13, %v1132_v48  ;;  %v936_v40 = vmul.f32 %v935_v58, %v2699_v54 }
 0x212   :  { %v967_v12 = vmul.f32 %v2812_v60, %v2783_v31  ;;  %1840 = vpow2.f32 %v1723_v56  ;;  %v1136_v61 = vand.u32 2147483648, %v2683_v13  ;;  %v1164_v34 = vmul.f32 %v2801_v44, %v1163_v1 }
 0x213   :  { %1842 = vrcp.f32 %v1211_v19  ;;  %vm1135_vm8 = vcmp.eq.f32.partialorder %v2683_v13, 0.0  ;;  %vm925_vm9 = vcmp.eq.f32.partialorder %v2681_v38, inf  ;;  %v1839_v8 = vpop.eup %1838  ;;  %v2835_v23 = vmul.f32 0.5, %v1152_v15 }
 0x214   :  { %1844 = vrsqrt.f32 %v2829_v20  ;;  %v1137_v2 = vsel %vm1135_vm8, %v1136_v61, %v1134_v11  ;;  %v926_v24 = vsel %vm925_vm9, %v2681_v38, %v924_v6  ;;  %v1144_v28 = vmul.f32 %v1143_v59, %v2715_v16 }
 0x215   :  { %1846 = vpow2.f32 %v1722_v4  ;;  %v957_v26 = vmul.f32 0.5, %v956_v10  ;;  %v928_v17 = vand.u32 2147483648, %v2681_v38  ;;  %v946_v25 = vsub.f32 1.5, %v2822_v9  ;;  %v645_v10 = vpop.xlane.xlu1 %644 }
 0x216   :  { %v1197_v21 = vadd.f32 1e-07, %v1137_v2  ;;  %vm927_vm10 = vcmp.eq.f32.partialorder %v2681_v38, 0.0  ;;  %vm937_vm11 = vcmp.eq.f32.partialorder %v2699_v54, inf  ;;  %v1165_v13 = vmul.f32 0.5, %v1164_v34 }
 0x217   :  { %v968_v33 = vmul.f32 %v2812_v60, %v967_v12  ;;  %v929_v51 = vsel %vm927_vm10, %v928_v17, %v926_v24  ;;  %v938_v37 = vsel %vm937_vm11, %v2699_v54, %v936_v40  ;;  %v1154_v57 = vsub.f32 1.5, %v2835_v23 }
 0x218   :  { %v1841_v39 = vpop.eup %1840  ;;  %v989_v45 = vadd.f32 1e-07, %v929_v51  ;;  %v940_v0 = vand.u32 2147483648, %v2699_v54  ;;  %vm1145_vm12 = vcmp.eq.f32.partialorder %v2715_v16, inf  ;;  %v958_v32 = vsub.f32 1.5, %v957_v26 }
 0x219   :  { %v1843_v46 = vpop.eup %1842  ;;  %v2849_v38 = vadd.f32 1.0, %v1841_v39  ;;  %vm939_vm13 = vcmp.eq.f32.partialorder %v2699_v54, 0.0  ;;  %v1146_v47 = vsel %vm1145_vm12, %v2715_v16, %v1144_v28  ;;  %v1148_v30 = vand.u32 2147483648, %v2715_v16 }
 0x21a   :  { %v2853_v63 = vpop.eup %1844  ;;  %v1243_v49 = vmul.f32 %v1843_v46, %v639_v3  ;;  %v1213_v41 = vmul.f32 %v1197_v21, %v989_v45  ;;  %v941_v48 = vsel %vm939_vm13, %v940_v0, %v938_v37  ;;  %v1166_v52 = vsub.f32 1.5, %v1165_v13 }
 0x21b   :  { %v1847_v53 = vpop.eup %1846  ;;  %v969_v58 = vmul.f32 0.5, %v968_v33  ;;  %vm1147_vm14 = vcmp.eq.f32.partialorder %v2715_v16, 0.0  ;;  %vm913_vm15 = vcmp.eq.f32.partialorder %v2637_v62, inf  ;;  %v1175_v29 = vmul.f32 %v2853_v63, %v2829_v20 }
 0x21c   :  { %1848 = vrcp.f32 %v1213_v41  ;;  %v1149_v54 = vsel %vm1147_vm14, %v1148_v30, %v1146_v47  ;;  %v914_v4 = vsel %vm913_vm15, %v2637_v62, %v2810_v14  ;;  %v990_v1 = vadd.f32 1e-07, %v941_v48 }
 0x21d   :  { %1850 = vrcp.f32 %v2849_v38  ;;  %v1198_v6 = vadd.f32 1e-07, %v1149_v54  ;;  %v916_v15 = vand.u32 2147483648, %v2637_v62  ;;  %v1724_v56 = vmul.f32 -1.442695, %v1243_v49 }
 0x21e   :  { %v1176_v19 = vmul.f32 %v2853_v63, %v1175_v29  ;;  %vm915_vm0 = vcmp.eq.f32.partialorder %v2637_v62, 0.0  ;;  %vm1121_vm1 = vcmp.eq.f32.partialorder %v2661_v43, inf  ;;  %v1124_v14 = vand.u32 2147483648, %v2661_v43 }
 0x21f   :  { %v1214_v16 = vmul.f32 %v1198_v6, %v990_v1  ;;  %v917_v9 = vsel %vm915_vm0, %v916_v15, %v914_v4  ;;  %v1122_v59 = vsel %vm1121_vm1, %v2661_v43, %v2815_v5  ;;  %vm1123_vm2 = vcmp.eq.f32.partialorder %v2661_v43, 0.0 }
 0x220   :  { %v988_v11 = vadd.f32 1e-07, %v917_v9  ;;  %v2871_v40 = vadd.f32 1.0, %v1839_v8  ;;  %v947_v12 = vmul.f32 %v2780_v7, %v946_v25  ;;  %v1125_v61 = vsel %vm1123_vm2, %v1124_v14, %v1122_v59  ;;  %v648_v25 = vpop.xlane.xlu2 %647 }
 0x221   :  { %1852 = vrcp.f32 %v1214_v16  ;;  %v959_v34 = vmul.f32 %v2795_v36, %v958_v32  ;;  %v1177_v23 = vmul.f32 0.5, %v1176_v19  ;;  %v1196_v2 = vadd.f32 1e-07, %v1125_v61 }
 0x222   :  { %v1849_v62 = vpop.eup %1848  ;;  %1854 = vpow2.f32 %v1724_v56  ;;  %v1155_v5 = vmul.f32 %v2790_v50, %v1154_v57  ;;  %v1167_v28 = vmul.f32 %v2801_v44, %v1166_v52  ;;  %v970_v26 = vsub.f32 1.5, %v969_v58 }
 0x223   :  { %v2875_v24 = vpop.eup %1850  ;;  %v1245_v43 = vmul.f32 %v1849_v62, %v645_v10  ;;  %v1212_v8 = vmul.f32 %v1196_v2, %v988_v11  ;;  %1856 = vrcp.f32 %v2871_v40  ;;  %v2880_v7 = vadd.f32 1.0, %v1847_v53 }
 0x224   :  { %v960_v36 = vmul.f32 %v959_v34, %v2764_v22  ;;  %v1435_v21 = vmul.f32 %v2875_v24, %v2849_v38  ;;  %v1178_v13 = vsub.f32 1.5, %v1177_v23  ;;  %v948_v50 = vmul.f32 %v947_v12, %v2724_v42 }
 0x225   :  { %v1726_v17 = vmul.f32 -1.442695, %v1245_v43  ;;  %1858 = vrcp.f32 %v1212_v8  ;;  %v1156_v44 = vmul.f32 %v1155_v5, %v2743_v35  ;;  %v1168_v3 = vmul.f32 %v1167_v28, %v2766_v27 }
 0x226   :  { %v971_v51 = vmul.f32 %v2812_v60, %v970_v26  ;;  %vm1169_vm3 = vcmp.eq.f32.partialorder %v2766_v27, inf  ;;  %vm1171_vm4 = vcmp.eq.f32.partialorder %v2766_v27, 0.0  ;;  %v1172_v57 = vand.u32 2147483648, %v2766_v27  ;;  %v642_v60 = vpop.xlane.xlu0 %641 }
 0x227   :  { %v1853_v33 = vpop.eup %1852  ;;  %1860 = vpow2.f32 %v1726_v17  ;;  %vm961_vm5 = vcmp.eq.f32.partialorder %v2764_v22, inf  ;;  %vm963_vm6 = vcmp.eq.f32.partialorder %v2764_v22, 0.0  ;;  %v964_v45 = vand.u32 2147483648, %v2764_v22 }
 0x228   :  { %v1855_v37 = vpop.eup %1854  ;;  %v1246_v39 = vmul.f32 %v1853_v33, %v648_v25  ;;  %v1436_v0 = vsub.f32 1.0, %v1435_v21  ;;  %v1179_v46 = vmul.f32 %v2853_v63, %v1178_v13  ;;  %v962_v47 = vsel %vm961_vm5, %v2764_v22, %v960_v36 }
 0x229   :  { %v2897_v49 = vpop.eup %1856  ;;  %v2899_v41 = vadd.f32 1.0, %v1855_v37  ;;  %v1170_v48 = vsel %vm1169_vm3, %v2766_v27, %v1168_v3  ;;  %v965_v30 = vsel %vm963_vm6, %v964_v45, %v962_v47  ;;  %vm949_vm7 = vcmp.eq.f32.partialorder %v2724_v42, inf }
 0x22a   :  { %v1727_v32 = vmul.f32 -1.442695, %v1246_v39  ;;  %v972_v52 = vmul.f32 %v971_v51, %v2783_v31  ;;  %v1173_v63 = vsel %vm1171_vm4, %v1172_v57, %v1170_v48  ;;  %v950_v58 = vsel %vm949_vm7, %v2724_v42, %v948_v50 }
 0x22b   :  { %v1859_v53 = vpop.eup %1858  ;;  %v1200_v22 = vadd.f32 1e-07, %v1173_v63  ;;  %v992_v54 = vadd.f32 1e-07, %v965_v30  ;;  %vm951_vm8 = vcmp.eq.f32.partialorder %v2724_v42, 0.0  ;;  %v1437_v1 = vmul.f32 %v2875_v24, %v1436_v0 }
 0x22c   :  { %1862 = vpow2.f32 %v1727_v32  ;;  %v1244_v29 = vmul.f32 %v1859_v53, %v642_v60  ;;  %v1180_v6 = vmul.f32 %v1179_v46, %v2829_v20  ;;  %v952_v15 = vand.u32 2147483648, %v2724_v42 }
 0x22d   :  { %v1861_v4 = vpop.eup %1860  ;;  %vm1157_vm9 = vcmp.eq.f32.partialorder %v2743_v35, inf  ;;  %1864 = vrcp.f32 %v2899_v41  ;;  %v1216_v56 = vmul.f32 %v1200_v22, %v992_v54  ;;  %vm973_vm10 = vcmp.eq.f32.partialorder %v2783_v31, inf }
 0x22e   :  { %v1725_v27 = vmul.f32 -1.442695, %v1244_v29  ;;  %v2914_v19 = vadd.f32 1.0, %v1861_v4  ;;  %vm975_vm11 = vcmp.eq.f32.partialorder %v2783_v31, 0.0  ;;  %v976_v16 = vand.u32 2147483648, %v2783_v31 }
 0x22f   :  { %vm1181_vm12 = vcmp.eq.f32.partialorder %v2829_v20, inf  ;;  %vm1183_vm13 = vcmp.eq.f32.partialorder %v2829_v20, 0.0  ;;  %v1184_v9 = vand.u32 2147483648, %v2829_v20  ;;  %v953_v59 = vsel %vm951_vm8, %v952_v15, %v950_v58 }
 0x230   :  { %v1158_v14 = vsel %vm1157_vm9, %v2743_v35, %v1156_v44  ;;  %1866 = vpow2.f32 %v1725_v27  ;;  %v974_v11 = vsel %vm973_vm10, %v2783_v31, %v972_v52  ;;  %v1182_v12 = vsel %vm1181_vm12, %v2829_v20, %v1180_v6 }
 0x231   :  { %v1160_v61 = vand.u32 2147483648, %v2743_v35  ;;  %1868 = vrcp.f32 %v1216_v56  ;;  %vm1159_vm14 = vcmp.eq.f32.partialorder %v2743_v35, 0.0  ;;  %v1405_v34 = vmul.f32 %v2897_v49, %v2871_v40 }
 0x232   :  { %v1863_v10 = vpop.eup %1862  ;;  %1870 = vrcp.f32 %v2914_v19  ;;  %v977_v42 = vsel %vm975_vm11, %v976_v16, %v974_v11  ;;  %v1185_v23 = vsel %vm1183_vm13, %v1184_v9, %v1182_v12  ;;  %v1438_v20 = vadd.f32 %v2875_v24, %v1437_v1  ;;  %v657_v1 = vpop.xlane.xlu2 %656 }
 0x233   :  { %v2927_v62 = vadd.f32 1.0, %v1863_v10  ;;  %v1161_v2 = vsel %vm1159_vm14, %v1160_v61, %v1158_v14  ;;  %v2935_v5 = vpop.eup %1864  ;;  %1872 = vrcp.f32 %v2880_v7  ;;  %vm1440_vm15 = vweird.f32 %v2875_v24  ;;  %v651_v9 = vpop.xlane.xlu0 %650 }
 0x234   :  { %v1445_v35 = vand.u32 2147483648, %v2849_v38  ;;  %vm1439_vm0 = vweird.f32 %v2849_v38  ;;  %v993_v28 = vadd.f32 1e-07, %v977_v42  ;;  %v1201_v26 = vadd.f32 1e-07, %v1185_v23 }
 0x235   :  { %v1199_v43 = vadd.f32 1e-07, %v1161_v2  ;;  %v1443_v31 = vand.u32 2147483647, %v2849_v38  ;;  %1874 = vrcp.f32 %v2927_v62  ;;  %v991_v8 = vadd.f32 1e-07, %v953_v59  ;;  %vm2944_vm1 = vmor %vm1439_vm0, %vm1440_vm15  ;;  %v654_v38 = vpop.xlane.xlu1 %653 }
 0x236   :  { %v1406_v17 = vsub.f32 1.0, %v1405_v34  ;;  %v1867_v25 = vpop.eup %1866  ;;  %v1217_v21 = vmul.f32 %v1201_v26, %v993_v28  ;;  %v1442_v33 = vsel %vm2944_vm1, %v2875_v24, %v1438_v20  ;;  %v1450_v50 = vmul.f32 %v2935_v5, %v2899_v41 }
 0x237   :  { %v1869_v13 = vpop.eup %1868  ;;  %v2953_v44 = vadd.f32 1.0, %v1867_v25  ;;  %v1215_v3 = vmul.f32 %v1199_v43, %v991_v8  ;;  %v1446_v37 = vor.u32 1.1754944e-38, %v1445_v35  ;;  %v2961_v0 = vadd.s32 4294967232, %v2445_v18 }
 0x238   :  { %v2955_v51 = vpop.eup %1870  ;;  %v1248_v39 = vmul.f32 %v1869_v13, %v654_v38  ;;  %1876 = vrcp.f32 %v1217_v21  ;;  %v1407_v57 = vmul.f32 %v2897_v49, %v1406_v17  ;;  %vm1444_vm2 = vcmp.eq.f32.partialorder %v1443_v31, 8.507059e+37 }
 0x239   :  { %v2958_v45 = vpop.eup %1872  ;;  %v1460_v24 = vand.u32 2147483648, %v2899_v41  ;;  %1878 = vrcp.f32 %v2953_v44  ;;  %v2965_v46 = vsel %vm1444_vm2, %v1446_v37, %v1442_v33  ;;  %v2970_v47 = vadd.s32 4294967224, %v2445_v18 }
 0x23a   :  { %v1729_v32 = vmul.f32 -1.442695, %v1248_v39  ;;  %v1451_v48 = vsub.f32 1.0, %v1450_v50  ;;  %v1480_v30 = vmul.f32 %v2955_v51, %v2914_v19  ;;  %1880 = vrcp.f32 %v1215_v3 }
 0x23b   :  { %v2967_v60 = vpop.eup %1874  ;;  %v1458_v53 = vand.u32 2147483647, %v2899_v41  ;;  %v1408_v52 = vadd.f32 %v2897_v49, %v1407_v57  ;;  %vm1410_vm3 = vweird.f32 %v2897_v49  ;;  %v1602_v63 = vperm.slane %v2965_v46, %v2961_v0 }
 0x23c   :  { %1882 = vpow2.f32 %v1729_v32  ;;  %v2979_v58 = vor.u32 1.1754944e-38, %v1460_v24  ;;  %v1415_v29 = vand.u32 2147483648, %v2871_v40  ;;  %v1420_v22 = vmul.f32 %v2958_v45, %v2880_v7 }
 0x23d   :  { %vm1455_vm4 = vweird.f32 %v2935_v5  ;;  %v1495_v4 = vmul.f32 %v2967_v60, %v2927_v62  ;;  %vm1409_vm5 = vweird.f32 %v2871_v40  ;;  %v1413_v6 = vand.u32 2147483647, %v2871_v40 }
 0x23e   :  { %v1877_v54 = vpop.eup %1876  ;;  %v1452_v27 = vmul.f32 %v2935_v5, %v1451_v48  ;;  %v1481_v56 = vsub.f32 1.0, %v1480_v30  ;;  %vm2994_vm6 = vmor %vm1409_vm5, %vm1410_vm3  ;;  %v1421_v14 = vsub.f32 1.0, %v1420_v22  ;;  %vm1454_vm7 = vweird.f32 %v2899_v41 }
 0x23f   :  { %v2989_v15 = vpop.eup %1878  ;;  %v1249_v16 = vmul.f32 %v1877_v54, %v657_v1  ;;  %v1412_v40 = vsel %vm2994_vm6, %v2897_v49, %v1408_v52  ;;  %vm1425_vm8 = vweird.f32 %v2958_v45  ;;  %v1430_v11 = vand.u32 2147483648, %v2880_v7  ;;  %vm3033_vm1 = vmor %vm1454_vm7, %vm1455_vm4 }
 0x240   :  { %v1465_v10 = vmul.f32 %v2989_v15, %v2953_v44  ;;  %v1881_v12 = vpop.eup %1880  ;;  %v1416_v34 = vor.u32 1.1754944e-38, %v1415_v29  ;;  %v1422_v42 = vmul.f32 %v2958_v45, %v1421_v14  ;;  %v1428_v23 = vand.u32 2147483647, %v2880_v7 }
 0x241   :  { %v1730_v61 = vmul.f32 -1.442695, %v1249_v16  ;;  %v1496_v20 = vsub.f32 1.0, %v1495_v4  ;;  %v1247_v35 = vmul.f32 %v1881_v12, %v651_v9  ;;  %vm1414_vm9 = vcmp.eq.f32.partialorder %v1413_v6, 8.507059e+37 }
 0x242   :  { %v1883_v2 = vpop.eup %1882  ;;  %vm1424_vm10 = vweird.f32 %v2880_v7  ;;  %v1417_v49 = vsel %vm1414_vm9, %v1416_v34, %v1412_v40  ;;  %v1423_v26 = vadd.f32 %v2958_v45, %v1422_v42  ;;  %v1466_v43 = vsub.f32 1.0, %v1465_v10 }
 0x243   :  { %v3009_v28 = vadd.f32 1.0, %v1883_v2  ;;  %1884 = vpow2.f32 %v1730_v61  ;;  %v1728_v31 = vmul.f32 -1.442695, %v1247_v35  ;;  %vm1426_vm11 = vmor %vm1424_vm10, %vm1425_vm8  ;;  %v1431_v8 = vor.u32 1.1754944e-38, %v1430_v11 }
 0x244   :  { %v1593_v17 = vadd.s32 4294967248, %v2445_v18  ;;  %vm3015_vm12 = vcmp.eq.f32.partialorder %v1458_v53, 8.507059e+37  ;;  %v1488_v7 = vand.u32 2147483647, %v2914_v19  ;;  %v1427_v36 = vsel %vm1426_vm11, %v2958_v45, %v1423_v26 }
 0x245   :  { %1886 = vrcp.f32 %v3009_v28  ;;  %vm1429_vm13 = vcmp.eq.f32.partialorder %v1428_v23, 8.507059e+37  ;;  %v1453_v21 = vadd.f32 %v2935_v5, %v1452_v27  ;;  %vm1595_vm14 = vcmask 458112  }
 0x246   :  { %1888 = vpow2.f32 %v1728_v31  ;;  %v1432_v13 = vsel %vm1429_vm13, %v1431_v8, %v1427_v36  ;;  %v1482_v33 = vmul.f32 %v2955_v51, %v1481_v56  ;;  %v1497_v50 = vmul.f32 %v2967_v60, %v1496_v20 }
 0x247   :  { %v1594_v38 = vperm.slane %v1417_v49, %v1593_v17  ;;  %v1597_v3 = vadd.s32 4294967240, %v2445_v18  ;;  %vm1484_vm15 = vweird.f32 %v2914_v19  ;;  %v1490_v37 = vand.u32 2147483648, %v2914_v19 }
 0x248   :  { %v1467_v39 = vmul.f32 %v2989_v15, %v1466_v43  ;;  %vm1599_vm0 = vcmask 523712   ;;  %vm3037_vm2 = vcmp.eq.f32.partialorder %v1488_v7, 8.507059e+37  ;;  %v1503_v32 = vand.u32 2147483647, %v2927_v62 }
 0x249   :  { %v1885_v57 = vpop.eup %1884  ;;  %v1596_v48 = vsel %vm1595_vm14, %v1594_v38, %v2769_v55  ;;  %v1598_v30 = vperm.slane %v1432_v13, %v1597_v3  ;;  %v1457_v53 = vsel %vm3033_vm1, %v2935_v5, %v1453_v21  ;;  %vm1485_vm3 = vweird.f32 %v2955_v51 }
 0x24a   :  { %v1505_v41 = vand.u32 2147483648, %v2927_v62  ;;  %v3048_v52 = vadd.f32 1.0, %v1885_v57  ;;  %v1483_v22 = vadd.f32 %v2955_v51, %v1482_v33  ;;  %v1498_v54 = vadd.f32 %v2967_v60, %v1497_v50  ;;  %vm3062_vm6 = vmor %vm1484_vm15, %vm1485_vm3 }
 0x24b   :  { %v3050_v29 = vpop.eup %1886  ;;  %vm1500_vm4 = vweird.f32 %v2967_v60  ;;  %v1600_v55 = vsel %vm1599_vm0, %v1598_v30, %v1596_v48  ;;  %v1468_v1 = vadd.f32 %v2989_v15, %v1467_v39  ;;  %vm1470_vm5 = vweird.f32 %v2989_v15 }
 0x24c   :  { %v1889_v4 = vpop.eup %1888  ;;  %v1525_v5 = vmul.f32 %v3050_v29, %v3009_v28  ;;  %1890 = vrcp.f32 %v3048_v52  ;;  %vm1499_vm7 = vweird.f32 %v2927_v62  ;;  %v1473_v27 = vand.u32 2147483647, %v2953_v44 }
 0x24d   :  { %v1475_v56 = vand.u32 2147483648, %v2953_v44  ;;  %v3069_v16 = vadd.f32 1.0, %v1889_v4  ;;  %v1462_v9 = vsel %vm3015_vm12, %v2979_v58, %v1457_v53  ;;  %v1491_v59 = vor.u32 1.1754944e-38, %v1490_v37  ;;  %vm3074_vm8 = vmor %vm1499_vm7, %vm1500_vm4 }
 0x24e   :  { %vm1469_vm9 = vweird.f32 %v2953_v44  ;;  %v1526_v19 = vsub.f32 1.0, %v1525_v5  ;;  %v1487_v62 = vsel %vm3062_vm6, %v2955_v51, %v1483_v22  ;;  %v1535_v40 = vand.u32 2147483648, %v3009_v28 }
 0x24f   :  { %vm3082_vm10 = vmor %vm1469_vm9, %vm1470_vm5  ;;  %1892 = vrcp.f32 %v3069_v16  ;;  %v1502_v58 = vsel %vm3074_vm8, %v2967_v60, %v1498_v54  ;;  %vm1504_vm11 = vcmp.eq.f32.partialorder %v1503_v32, 8.507059e+37  ;;  %v1506_v11 = vor.u32 1.1754944e-38, %v1505_v41 }
 0x250   :  { %v1472_v44 = vsel %vm3082_vm10, %v2989_v15, %v1468_v1  ;;  %v1533_v51 = vand.u32 2147483647, %v3009_v28  ;;  %v1606_v12 = vperm.slane %v1462_v9, %v2970_v47  ;;  %vm1474_vm12 = vcmp.eq.f32.partialorder %v1473_v27, 8.507059e+37 }
 0x251   :  { %v1476_v61 = vor.u32 1.1754944e-38, %v1475_v56  ;;  %v1527_v34 = vmul.f32 %v3050_v29, %v1526_v19  ;;  %v1492_v23 = vsel %vm3037_vm2, %v1491_v59, %v1487_v62  ;;  %v3099_v2 = vsel %vm1504_vm11, %v1506_v11, %v1502_v58 }
 0x252   :  { %v1891_v42 = vpop.eup %1890  ;;  %vm1603_vm13 = vcmask 589312   ;;  %v1609_v60 = vadd.s32 4294967216, %v2445_v18  ;;  %vm1529_vm14 = vweird.f32 %v3009_v28  ;;  %v1536_v35 = vor.u32 1.1754944e-38, %v1535_v40 }
 0x253   :  { %v1477_v20 = vsel %vm1474_vm12, %v1476_v61, %v1472_v44  ;;  %v1540_v15 = vmul.f32 %v1891_v42, %v3048_v52  ;;  %vm3104_vm15 = vcmp.eq.f32.partialorder %v1533_v51, 8.507059e+37  ;;  %vm1607_vm0 = vcmask 654912  }
 0x254   :  { %vm1611_vm1 = vcmask 720512   ;;  %v1613_v49 = vadd.s32 4294967208, %v2445_v18  ;;  %v1528_v31 = vadd.f32 %v3050_v29, %v1527_v34  ;;  %vm1530_vm2 = vweird.f32 %v3050_v29 }
 0x255   :  { %v1893_v26 = vpop.eup %1892  ;;  %v1541_v43 = vsub.f32 1.0, %v1540_v15  ;;  %v1604_v8 = vsel %vm1603_vm13, %v1602_v63, %v1600_v55  ;;  %v1548_v25 = vand.u32 2147483647, %v3048_v52  ;;  %v1610_v7 = vperm.slane %v1477_v20, %v1609_v60  ;;  %vm3120_vm5 = vmor %vm1529_vm14, %vm1530_vm2 }
 0x256   :  { %v1510_v17 = vmul.f32 %v1893_v26, %v3069_v16  ;;  %vm1615_vm3 = vcmask 786112   ;;  %vm1545_vm4 = vweird.f32 %v1891_v42  ;;  %v1550_v21 = vand.u32 2147483648, %v3048_v52 }
 0x257   :  { %v1542_v36 = vmul.f32 %v1891_v42, %v1541_v43  ;;  %v1617_v13 = vadd.s32 4294967200, %v2445_v18  ;;  %vm1544_vm6 = vweird.f32 %v3048_v52  ;;  %v1608_v0 = vsel %vm1607_vm0, %v1606_v12, %v1604_v8 }
 0x258   :  { %v1511_v33 = vsub.f32 1.0, %v1510_v17  ;;  %v1614_v46 = vperm.slane %v1492_v23, %v1613_v49  ;;  %vm1514_vm7 = vweird.f32 %v3069_v16  ;;  %v1520_v63 = vand.u32 2147483648, %v3069_v16  ;;  %vm1546_vm9 = vmor %vm1544_vm6, %vm1545_vm4 }
 0x259   :  { %v1532_v38 = vsel %vm3120_vm5, %v3050_v29, %v1528_v31  ;;  %v1543_v3 = vadd.f32 %v1891_v42, %v1542_v36  ;;  %vm1515_vm8 = vweird.f32 %v1893_v26  ;;  %v1518_v28 = vand.u32 2147483647, %v3069_v16 }
 0x25a   :  { %v1512_v37 = vmul.f32 %v1893_v26, %v1511_v33  ;;  %vm1549_vm10 = vcmp.eq.f32.partialorder %v1548_v25, 8.507059e+37  ;;  %v1551_v57 = vor.u32 1.1754944e-38, %v1550_v21  ;;  %v1612_v45 = vsel %vm1611_vm1, %v1610_v7, %v1608_v0  ;;  %vm1516_vm11 = vmor %vm1514_vm7, %vm1515_vm8 }
 0x25b   :  { %v1547_v39 = vsel %vm1546_vm9, %v1891_v42, %v1543_v3  ;;  %v1625_v24 = vadd.s32 4294967184, %v2445_v18  ;;  %v1537_v48 = vsel %vm3104_vm15, %v1536_v35, %v1532_v38  ;;  %v1621_v30 = vadd.s32 4294967192, %v2445_v18 }
 0x25c   :  { %v1513_v32 = vadd.f32 %v1893_v26, %v1512_v37  ;;  %v1629_v53 = vadd.s32 4294967176, %v2445_v18  ;;  %v1521_v41 = vor.u32 1.1754944e-38, %v1520_v63  ;;  %v1552_v52 = vsel %vm1549_vm10, %v1551_v57, %v1547_v39 }
 0x25d   :  { %vm1519_vm12 = vcmp.eq.f32.partialorder %v1518_v28, 8.507059e+37  ;;  %v1616_v22 = vsel %vm1615_vm3, %v1614_v46, %v1612_v45  ;;  %vm1619_vm13 = vcmask 851712   ;;  %v1618_v55 = vperm.slane %v3099_v2, %v1617_v13 }
 0x25e   :  { %v1517_v29 = vsel %vm1516_vm11, %v1893_v26, %v1513_v32  ;;  %vm1623_vm14 = vcmask 917312   ;;  %v1626_v4 = vperm.slane %v1537_v48, %v1625_v24  ;;  %vm1627_vm15 = vcmask 982912  }
 0x25f   :  { %v1522_v54 = vsel %vm1519_vm12, %v1521_v41, %v1517_v29  ;;  %v1630_v5 = vperm.slane %v1552_v52, %v1629_v53  ;;  %v1620_v18 = vsel %vm1619_vm13, %v1618_v55, %v1616_v22  ;;  %vm1631_vm0 = vcmask 1048512  }
 0x260   :  { %v1622_v1 = vperm.slane %v1522_v54, %v1621_v30 }
 0x262   :  { %v1624_v6 = vsel %vm1623_vm14, %v1622_v1, %v1620_v18 }
 0x263   :  { %v1628_v27 = vsel %vm1627_vm15, %v1626_v4, %v1624_v6 }
 0x264   :  { %v1632_v56 = vsel %vm1631_vm0, %v1630_v5, %v1628_v27 }
 0x265   :  { %1634 = vst [vmem:[#allocation2] sm:$0x1] %v1632_v56 }
 0x266   :  { %1645 = dma.vmem_to_hbm [thread:$0]  %s1641_s5, 16, %s1643_s12, [#allocation3]  }
 0x267   :  { %1918 = dma.done.wait [#allocation3], 16  }
 0x268   :  { %1919 = vsyncadd [#allocation3], 4294967280 }
 0x269   :  { %1650 = vsyncpa [#allocation3], 1 }

</bundles_post_ra>
